<compile_context>
chip_gen: v7x
topology: tpu7x:2x2x1
jax: 0.10.0
libtpu: 0.0.40
codegen_flags: <defaults>
</compile_context>

<pallas_src>
import jax
import jax.numpy as jnp
from jax.experimental import pallas as pl
from jax.experimental.pallas import tpu as pltpu


def vq_kernel(z_ref, w_ref, wt_ref, hwsq_ref, q_ref, zq_ref):
    """One (D, ts) channel-major tile of z_e -> indices + quantized tile."""
    z = z_ref[0]               # (D, ts)  input dtype (no up-cast; feeds MXU)
    w = w_ref[...]             # (K, D)   codebook in z's dtype
    wt = wt_ref[...]           # (D, K)   codebook^T in the codebook's dtype
    half_wsq = hwsq_ref[...]   # (K, 1)   0.5*||w||^2, f32 (precomputed)

    K = w.shape[0]

    # argmin_k ||z - w_k||^2 == argmax_k (w_k.z - 0.5*||w_k||^2): the per-column
    # ||z||^2 term cannot change the argmin and is dropped; the 0.5 factor is
    # folded into the precomputed bias so no (K, ts) VPU multiply is needed.
    dots = jnp.dot(w, z, preferred_element_type=jnp.float32)      # (K, ts) MXU
    score = dots - half_wsq                                       # (K, ts) f32

    # First-match argmax along K (sublane axis): max + (K,1) iota + select.
    best = jnp.max(score, axis=0, keepdims=True)                  # (1, ts)
    k_iota = jax.lax.broadcasted_iota(jnp.int32, (K, 1), 0)       # (K, 1)
    q = jnp.min(jnp.where(score == best, k_iota, K),
                axis=0, keepdims=True)                            # (1, ts) i32

    q_ref[...] = q[None]                                          # (1, 1, ts)

    # Exact gather of the selected codebook rows via one-hot matmul (MXU, f32
    # accumulation; one_hot built in the codebook's dtype keeps it bit-exact).
    one_hot = (k_iota == q).astype(wt.dtype)                      # (K, ts)
    zq = jnp.dot(wt, one_hot, preferred_element_type=jnp.float32) # (D, ts)
    zq_ref[...] = zq[None].astype(zq_ref.dtype)


def _vmem_bytes(D, K, ts, dtb):
    """Rough per-step VMEM footprint of the kernel (bytes)."""
    z_io = 2 * 2 * D * ts * dtb            # z in + z_q out, double-buffered
    q_io = 2 * ts * 4                      # index row, double-buffered
    interm = 3 * K * ts * 4                # score / one-hot / broadcast temps
    consts = 2 * (2 * K * D * dtb + K * 4)  # codebook, ^T, bias (worst case x2)
    return z_io + q_io + interm + consts


def _pick_tile(S_pad, N, D, K, dtb, budget_bytes, hard_cap=2048):
    """Largest multiple-of-128 divisor of S_pad whose per-step footprint fits
    the VMEM budget; keeps >= 2 total grid steps when possible (v7x megacore).
    """
    consts = 2 * (2 * K * D * dtb + K * 4)
    per_col = 2 * 2 * D * dtb + 2 * 4 + 3 * K * 4
    cap = max(128, min(hard_cap,
                       max(0, budget_bytes - consts) // per_col // 128 * 128))
    divisors = [t for t in range(128, S_pad + 1, 128) if S_pad % t == 0]
    fitting = [t for t in divisors if t <= cap] or [128]
    ts = max(fitting)
    if N * (S_pad // ts) < 2:              # keep both v7x TensorCores fed
        multi = [t for t in fitting if S_pad // t >= 2]
        if multi:
            ts = max(multi)
    return ts


def _build_call(N, D, K, S_pad, ts, out_dtype, vmem_limit_bytes,
                single_buffer_consts):
    def const_spec(shape):
        kwargs = {}
        if single_buffer_consts:
            # Constant index_map: double-buffering buys nothing; halve footprint.
            kwargs["pipeline_mode"] = pl.Buffered(1)
        return pl.BlockSpec(shape, lambda n, s: (0,) * len(shape), **kwargs)

    return pl.pallas_call(
        vq_kernel,
        out_shape=(
            jax.ShapeDtypeStruct((N, 1, S_pad), jnp.int32),
            jax.ShapeDtypeStruct((N, D, S_pad), out_dtype),
        ),
        grid_spec=pltpu.PrefetchScalarGridSpec(
            num_scalar_prefetch=0,
            grid=(N, S_pad // ts),
            in_specs=[
                pl.BlockSpec((1, D, ts), lambda n, s: (n, 0, s)),   # z tile
                const_spec((K, D)),                                  # codebook
                const_spec((D, K)),                                  # codebook^T
                const_spec((K, 1)),                                  # 0.5*||w||^2
            ],
            out_specs=[
                pl.BlockSpec((1, 1, ts), lambda n, s: (n, 0, s)),    # indices
                pl.BlockSpec((1, D, ts), lambda n, s: (n, 0, s)),    # z_q tile
            ],
        ),
        compiler_params=pltpu.CompilerParams(
            dimension_semantics=("parallel", "parallel"),
            vmem_limit_bytes=vmem_limit_bytes),
    )


def vector_quantizer(z_e, codebook, *, ts=None, vmem_budget_bytes=20 << 20):
    """z_e: (N, D, H, W); codebook: (K, D).

    Returns (q, z_q) matching the PyTorch module forward:
      q   : (N, H, W) int32 codebook indices (torch returns int64; cast if needed)
      z_q : (N, D, H, W) quantized encodings, in z_e's dtype
    """
    N, D, H, W = z_e.shape
    K, Dw = codebook.shape
    assert D == Dw

    S = H * W
    S_pad = ((S + 127) // 128) * 128       # lane-dense; remainder via padding
    dtb = jnp.dtype(z_e.dtype).itemsize

    if ts is None:
        ts = _pick_tile(S_pad, N, D, K, dtb, vmem_budget_bytes)
    assert S_pad % ts == 0 and ts % 128 == 0

    z_flat = z_e.reshape(N, D, S)          # free reshape (stays channel-major)
    if S_pad != S:
        z_flat = jnp.pad(z_flat, ((0, 0), (0, 0), (0, S_pad - S)))

    # Distance matmul runs in z's dtype; the gather stays in the codebook's
    # own dtype so the one-hot gather of z_q remains exact.
    w_dist = codebook if codebook.dtype == z_e.dtype else codebook.astype(z_e.dtype)
    w_t = jnp.transpose(codebook)                                   # (D, K)
    half_wsq = 0.5 * jnp.sum(codebook.astype(jnp.float32) ** 2,
                             axis=1, keepdims=True)                 # (K, 1) f32

    est = _vmem_bytes(D, K, ts, dtb)
    vmem_limit = int(min(48 << 20, max(24 << 20, 2 * est)))

    try:
        call = _build_call(N, D, K, S_pad, ts, z_e.dtype, vmem_limit, True)
        q_out, zq_out = call(z_flat, w_dist, w_t, half_wsq)
    except Exception:
        # pl.Buffered(1) not supported on this jax version/backend: fall back
        # to default double-buffered resident operands (identical results).
        call = _build_call(N, D, K, S_pad, ts, z_e.dtype, vmem_limit, False)
        q_out, zq_out = call(z_flat, w_dist, w_t, half_wsq)

    q = q_out[:, 0, :S].reshape(N, H, W)     # free reshapes, no transposes
    z_q = zq_out[:, :, :S].reshape(N, D, H, W)
    return q, z_q


def _reference(z_e, codebook):
    # Pure-JAX reference reproducing the PyTorch forward.
    N, D, H, W = z_e.shape
    zf = jnp.transpose(z_e, (0, 2, 3, 1)).reshape(-1, D).astype(jnp.float32)
    cb = codebook.astype(jnp.float32)
    dist = jnp.sum((zf[:, None, :] - cb[None, :, :]) ** 2, axis=2)
    q = jnp.argmin(dist, axis=1)
    zq = codebook[q].reshape(N, H, W, D).transpose(0, 3, 1, 2).astype(z_e.dtype)
    return q.reshape(N, H, W).astype(jnp.int32), zq


if __name__ == "__main__":
    key = jax.random.PRNGKey(0)

    def run_case(N, D, H, W, K, case_key):
        k_z, k_cb = jax.random.split(case_key)
        z_e = jax.random.normal(k_z, (N, D, H, W), dtype=jnp.float32)
        # Deterministic init matching nn.Embedding(...).weight.data.uniform_(-1/K, 1/K)
        codebook = jax.random.uniform(k_cb, (K, D), dtype=jnp.float32,
                                      minval=-1.0 / K, maxval=1.0 / K)
        q, z_q = vector_quantizer(z_e, codebook)
        jax.block_until_ready((q, z_q))
        q_ref, zq_ref = _reference(z_e, codebook)
        assert q.shape == (N, H, W) and z_q.shape == (N, D, H, W)
        assert q.dtype == jnp.int32
        assert bool(jnp.all(q == q_ref))
        assert bool(jnp.allclose(z_q, zq_ref, atol=1e-5, rtol=1e-5))

    k0, k1 = jax.random.split(key)
    # Small shapes consistent with the module: batch=2, D=32, spatial=16, K=128.
    run_case(2, 32, 16, 16, 128, k0)
    # Non-divisible spatial size (14x14 -> S=196) exercising the padded tail.
    run_case(2, 32, 14, 14, 128, k1)

    print("KERNEL_OK")
</pallas_src>

<mosaic_0001>
module attributes {stable_mosaic.version = 11 : i64} {
  func.func @vq_kernel(%arg0: i32, %arg1: i32, %arg2: memref<1x32x256xf32, #tpu.memory_space<vmem>>, %arg3: memref<128x32xf32, #tpu.memory_space<vmem>>, %arg4: memref<32x128xf32, #tpu.memory_space<vmem>>, %arg5: memref<128x1xf32, #tpu.memory_space<vmem>>, %arg6: memref<1x1x256xi32, #tpu.memory_space<vmem>>, %arg7: memref<1x32x256xf32, #tpu.memory_space<vmem>>) attributes {dimension_semantics = [#tpu.dimension_semantics<parallel>, #tpu.dimension_semantics<parallel>], iteration_bounds = array<i64: 2, 1>, scalar_prefetch = 0 : i64, scratch_operands = 0 : i64, tpu.core_type = #tpu.core_type<tc>, window_params = [{transform_indices = @transform_0, window_bounds = array<i64: 1, 32, 256>}, {pipeline_mode = #tpu.pipeline_mode<synchronous>, transform_indices = @transform_1, window_bounds = array<i64: 128, 32>}, {pipeline_mode = #tpu.pipeline_mode<synchronous>, transform_indices = @transform_2, window_bounds = array<i64: 32, 128>}, {pipeline_mode = #tpu.pipeline_mode<synchronous>, transform_indices = @transform_3, window_bounds = array<i64: 128, 1>}, {transform_indices = @transform_4, window_bounds = array<i64: 1, 1, 256>}, {transform_indices = @transform_5, window_bounds = array<i64: 1, 32, 256>}]} {
    %c0 = arith.constant 0 : index
    %c0_0 = arith.constant 0 : index
    %c0_1 = arith.constant 0 : index
    %0 = vector.load %arg2[%c0, %c0_0, %c0_1] : memref<1x32x256xf32, #tpu.memory_space<vmem>>, vector<1x32x256xf32>
    %1 = vector.shape_cast %0 : vector<1x32x256xf32> to vector<32x256xf32>
    %c0_2 = arith.constant 0 : index
    %c0_3 = arith.constant 0 : index
    %2 = vector.load %arg3[%c0_2, %c0_3] : memref<128x32xf32, #tpu.memory_space<vmem>>, vector<128x32xf32>
    %c0_4 = arith.constant 0 : index
    %c0_5 = arith.constant 0 : index
    %3 = vector.load %arg4[%c0_4, %c0_5] : memref<32x128xf32, #tpu.memory_space<vmem>>, vector<32x128xf32>
    %c0_6 = arith.constant 0 : index
    %c0_7 = arith.constant 0 : index
    %4 = vector.load %arg5[%c0_6, %c0_7] : memref<128x1xf32, #tpu.memory_space<vmem>>, vector<128x1xf32>
    %cst = arith.constant dense<0.000000e+00> : vector<128x256xf32>
    %5 = tpu.matmul %2, %1, %cst {dimension_numbers = #tpu.dot_dimension_numbers<[1], [0], [0], [1], [0, 0, 1, 1], [], []>} : vector<128x32xf32>, vector<32x256xf32>, vector<128x256xf32> -> vector<128x256xf32>
    %6 = vector.broadcast %4 : vector<128x1xf32> to vector<128x256xf32>
    %7 = arith.subf %5, %6 : vector<128x256xf32>
    %cst_8 = arith.constant dense<0xFF800000> : vector<256xf32>
    %8 = vector.multi_reduction <maximumf>, %7, %cst_8 [0] : vector<128x256xf32> to vector<256xf32>
    %9 = vector.shape_cast %8 : vector<256xf32> to vector<1x256xf32>
    %10 = tpu.iota {dimensions = array<i32: 0>} : vector<128x1xi32>
    %11 = vector.broadcast %9 : vector<1x256xf32> to vector<128x256xf32>
    %12 = arith.cmpf oeq, %7, %11 : vector<128x256xf32>
    %c128_i32 = arith.constant 128 : i32
    %13 = vector.shape_cast %10 : vector<128x1xi32> to vector<128x1xi32>
    %14 = vector.broadcast %13 : vector<128x1xi32> to vector<128x256xi32>
    %15 = vector.broadcast %c128_i32 : i32 to vector<128x256xi32>
    %16 = arith.select %12, %14, %15 : vector<128x256xi1>, vector<128x256xi32>
    %cst_9 = arith.constant dense<2147483647> : vector<256xi32>
    %17 = vector.multi_reduction <minsi>, %16, %cst_9 [0] : vector<128x256xi32> to vector<256xi32>
    %18 = vector.shape_cast %17 : vector<256xi32> to vector<1x256xi32>
    %19 = vector.shape_cast %18 : vector<1x256xi32> to vector<1x1x256xi32>
    %c0_10 = arith.constant 0 : index
    %c0_11 = arith.constant 0 : index
    %c0_12 = arith.constant 0 : index
    %20 = vector.load %arg6[%c0_10, %c0_11, %c0_12] : memref<1x1x256xi32, #tpu.memory_space<vmem>>, vector<1x1x256xi32>
    tpu.vector_store %arg6[%c0_10, %c0_11, %c0_12], %19 {strides = array<i32>} : memref<1x1x256xi32, #tpu.memory_space<vmem>>, vector<1x1x256xi32>,
    %21 = vector.broadcast %10 : vector<128x1xi32> to vector<128x256xi32>
    %22 = vector.broadcast %18 : vector<1x256xi32> to vector<128x256xi32>
    %23 = arith.cmpi eq, %21, %22 : vector<128x256xi32>
    %24 = arith.extui %23 : vector<128x256xi1> to vector<128x256xi32>
    %25 = arith.sitofp %24 : vector<128x256xi32> to vector<128x256xf32>
    %cst_13 = arith.constant dense<0.000000e+00> : vector<32x256xf32>
    %26 = tpu.matmul %3, %25, %cst_13 {dimension_numbers = #tpu.dot_dimension_numbers<[1], [0], [0], [1], [0, 0, 1, 1], [], []>} : vector<32x128xf32>, vector<128x256xf32>, vector<32x256xf32> -> vector<32x256xf32>
    %27 = vector.shape_cast %26 : vector<32x256xf32> to vector<1x32x256xf32>
    %c0_14 = arith.constant 0 : index
    %c0_15 = arith.constant 0 : index
    %c0_16 = arith.constant 0 : index
    %28 = vector.load %arg7[%c0_14, %c0_15, %c0_16] : memref<1x32x256xf32, #tpu.memory_space<vmem>>, vector<1x32x256xf32>
    tpu.vector_store %arg7[%c0_14, %c0_15, %c0_16], %27 {strides = array<i32>} : memref<1x32x256xf32, #tpu.memory_space<vmem>>, vector<1x32x256xf32>,
    return
  }
  func.func @transform_0(%arg0: i32, %arg1: i32) -> (i32, i32, i32) {
    %c0_i32 = arith.constant 0 : i32
    %c0_i32_0 = arith.constant 0 : i32
    return %arg0, %c0_i32, %arg1 : i32, i32, i32
  }
  func.func @transform_1(%arg0: i32, %arg1: i32) -> (i32, i32) {
    %c0_i32 = arith.constant 0 : i32
    %c0_i32_0 = arith.constant 0 : i32
    %c0_i32_1 = arith.constant 0 : i32
    return %c0_i32, %c0_i32_0 : i32, i32
  }
  func.func @transform_2(%arg0: i32, %arg1: i32) -> (i32, i32) {
    %c0_i32 = arith.constant 0 : i32
    %c0_i32_0 = arith.constant 0 : i32
    %c0_i32_1 = arith.constant 0 : i32
    return %c0_i32, %c0_i32_0 : i32, i32
  }
  func.func @transform_3(%arg0: i32, %arg1: i32) -> (i32, i32) {
    %c0_i32 = arith.constant 0 : i32
    %c0_i32_0 = arith.constant 0 : i32
    %c0_i32_1 = arith.constant 0 : i32
    return %c0_i32, %c0_i32_0 : i32, i32
  }
  func.func @transform_4(%arg0: i32, %arg1: i32) -> (i32, i32, i32) {
    %c0_i32 = arith.constant 0 : i32
    %c0_i32_0 = arith.constant 0 : i32
    return %arg0, %c0_i32, %arg1 : i32, i32, i32
  }
  func.func @transform_5(%arg0: i32, %arg1: i32) -> (i32, i32, i32) {
    %c0_i32 = arith.constant 0 : i32
    %c0_i32_0 = arith.constant 0 : i32
    return %arg0, %c0_i32, %arg1 : i32, i32, i32
  }
}

module attributes {stable_mosaic.version = 11 : i64} {
  func.func @vq_kernel(%arg0: i32, %arg1: i32, %arg2: memref<1x32x256xf32, #tpu.memory_space<vmem>>, %arg3: memref<128x32xf32, #tpu.memory_space<vmem>>, %arg4: memref<32x128xf32, #tpu.memory_space<vmem>>, %arg5: memref<128x1xf32, #tpu.memory_space<vmem>>, %arg6: memref<1x1x256xi32, #tpu.memory_space<vmem>>, %arg7: memref<1x32x256xf32, #tpu.memory_space<vmem>>) attributes {dimension_semantics = [#tpu.dimension_semantics<parallel>, #tpu.dimension_semantics<parallel>], iteration_bounds = array<i64: 2, 1>, scalar_prefetch = 0 : i64, scratch_operands = 0 : i64, tpu.core_type = #tpu.core_type<tc>, window_params = [{transform_indices = @transform_0, window_bounds = array<i64: 1, 32, 256>}, {pipeline_mode = #tpu.pipeline_mode<synchronous>, transform_indices = @transform_1, window_bounds = array<i64: 128, 32>}, {pipeline_mode = #tpu.pipeline_mode<synchronous>, transform_indices = @transform_2, window_bounds = array<i64: 32, 128>}, {pipeline_mode = #tpu.pipeline_mode<synchronous>, transform_indices = @transform_3, window_bounds = array<i64: 128, 1>}, {transform_indices = @transform_4, window_bounds = array<i64: 1, 1, 256>}, {transform_indices = @transform_5, window_bounds = array<i64: 1, 32, 256>}]} {
    %c0 = arith.constant 0 : index
    %c0_0 = arith.constant 0 : index
    %c0_1 = arith.constant 0 : index
    %0 = vector.load %arg2[%c0, %c0_0, %c0_1] : memref<1x32x256xf32, #tpu.memory_space<vmem>>, vector<1x32x256xf32>
    %1 = vector.shape_cast %0 : vector<1x32x256xf32> to vector<32x256xf32>
    %c0_2 = arith.constant 0 : index
    %c0_3 = arith.constant 0 : index
    %2 = vector.load %arg3[%c0_2, %c0_3] : memref<128x32xf32, #tpu.memory_space<vmem>>, vector<128x32xf32>
    %c0_4 = arith.constant 0 : index
    %c0_5 = arith.constant 0 : index
    %3 = vector.load %arg4[%c0_4, %c0_5] : memref<32x128xf32, #tpu.memory_space<vmem>>, vector<32x128xf32>
    %c0_6 = arith.constant 0 : index
    %c0_7 = arith.constant 0 : index
    %4 = vector.load %arg5[%c0_6, %c0_7] : memref<128x1xf32, #tpu.memory_space<vmem>>, vector<128x1xf32>
    %cst = arith.constant dense<0.000000e+00> : vector<128x256xf32>
    %5 = tpu.matmul %2, %1, %cst {dimension_numbers = #tpu.dot_dimension_numbers<[1], [0], [0], [1], [0, 0, 1, 1], [], []>} : vector<128x32xf32>, vector<32x256xf32>, vector<128x256xf32> -> vector<128x256xf32>
    %6 = vector.broadcast %4 : vector<128x1xf32> to vector<128x256xf32>
    %7 = arith.subf %5, %6 : vector<128x256xf32>
    %cst_8 = arith.constant dense<0xFF800000> : vector<256xf32>
    %8 = vector.multi_reduction <maximumf>, %7, %cst_8 [0] : vector<128x256xf32> to vector<256xf32>
    %9 = vector.shape_cast %8 : vector<256xf32> to vector<1x256xf32>
    %10 = tpu.iota {dimensions = array<i32: 0>} : vector<128x1xi32>
    %11 = vector.broadcast %9 : vector<1x256xf32> to vector<128x256xf32>
    %12 = arith.cmpf oeq, %7, %11 : vector<128x256xf32>
    %c128_i32 = arith.constant 128 : i32
    %13 = vector.shape_cast %10 : vector<128x1xi32> to vector<128x1xi32>
    %14 = vector.broadcast %13 : vector<128x1xi32> to vector<128x256xi32>
    %15 = vector.broadcast %c128_i32 : i32 to vector<128x256xi32>
    %16 = arith.select %12, %14, %15 : vector<128x256xi1>, vector<128x256xi32>
    %cst_9 = arith.constant dense<2147483647> : vector<256xi32>
    %17 = vector.multi_reduction <minsi>, %16, %cst_9 [0] : vector<128x256xi32> to vector<256xi32>
    %18 = vector.shape_cast %17 : vector<256xi32> to vector<1x256xi32>
    %19 = vector.shape_cast %18 : vector<1x256xi32> to vector<1x1x256xi32>
    %c0_10 = arith.constant 0 : index
    %c0_11 = arith.constant 0 : index
    %c0_12 = arith.constant 0 : index
    %20 = vector.load %arg6[%c0_10, %c0_11, %c0_12] : memref<1x1x256xi32, #tpu.memory_space<vmem>>, vector<1x1x256xi32>
    tpu.vector_store %arg6[%c0_10, %c0_11, %c0_12], %19 {strides = array<i32>} : memref<1x1x256xi32, #tpu.memory_space<vmem>>, vector<1x1x256xi32>,
    %21 = vector.broadcast %10 : vector<128x1xi32> to vector<128x256xi32>
    %22 = vector.broadcast %18 : vector<1x256xi32> to vector<128x256xi32>
    %23 = arith.cmpi eq, %21, %22 : vector<128x256xi32>
    %24 = arith.extui %23 : vector<128x256xi1> to vector<128x256xi32>
    %25 = arith.sitofp %24 : vector<128x256xi32> to vector<128x256xf32>
    %cst_13 = arith.constant dense<0.000000e+00> : vector<32x256xf32>
    %26 = tpu.matmul %3, %25, %cst_13 {dimension_numbers = #tpu.dot_dimension_numbers<[1], [0], [0], [1], [0, 0, 1, 1], [], []>} : vector<32x128xf32>, vector<128x256xf32>, vector<32x256xf32> -> vector<32x256xf32>
    %27 = vector.shape_cast %26 : vector<32x256xf32> to vector<1x32x256xf32>
    %c0_14 = arith.constant 0 : index
    %c0_15 = arith.constant 0 : index
    %c0_16 = arith.constant 0 : index
    %28 = vector.load %arg7[%c0_14, %c0_15, %c0_16] : memref<1x32x256xf32, #tpu.memory_space<vmem>>, vector<1x32x256xf32>
    tpu.vector_store %arg7[%c0_14, %c0_15, %c0_16], %27 {strides = array<i32>} : memref<1x32x256xf32, #tpu.memory_space<vmem>>, vector<1x32x256xf32>,
    return
  }
  func.func @transform_0(%arg0: i32, %arg1: i32) -> (i32, i32, i32) {
    %c0_i32 = arith.constant 0 : i32
    %c0_i32_0 = arith.constant 0 : i32
    return %arg0, %c0_i32, %arg1 : i32, i32, i32
  }
  func.func @transform_1(%arg0: i32, %arg1: i32) -> (i32, i32) {
    %c0_i32 = arith.constant 0 : i32
    %c0_i32_0 = arith.constant 0 : i32
    %c0_i32_1 = arith.constant 0 : i32
    return %c0_i32, %c0_i32_0 : i32, i32
  }
  func.func @transform_2(%arg0: i32, %arg1: i32) -> (i32, i32) {
    %c0_i32 = arith.constant 0 : i32
    %c0_i32_0 = arith.constant 0 : i32
    %c0_i32_1 = arith.constant 0 : i32
    return %c0_i32, %c0_i32_0 : i32, i32
  }
  func.func @transform_3(%arg0: i32, %arg1: i32) -> (i32, i32) {
    %c0_i32 = arith.constant 0 : i32
    %c0_i32_0 = arith.constant 0 : i32
    %c0_i32_1 = arith.constant 0 : i32
    return %c0_i32, %c0_i32_0 : i32, i32
  }
  func.func @transform_4(%arg0: i32, %arg1: i32) -> (i32, i32, i32) {
    %c0_i32 = arith.constant 0 : i32
    %c0_i32_0 = arith.constant 0 : i32
    return %arg0, %c0_i32, %arg1 : i32, i32, i32
  }
  func.func @transform_5(%arg0: i32, %arg1: i32) -> (i32, i32, i32) {
    %c0_i32 = arith.constant 0 : i32
    %c0_i32_0 = arith.constant 0 : i32
    return %arg0, %c0_i32, %arg1 : i32, i32, i32
  }
}

</mosaic_0001>

<bundles_post_ra>
// kernel: tpu_custom_call.1
= control target key start
LH: loop header
LB: loop body
LE: loop exit
PB: predicated region body
PF: predicated region fallthrough
CT: control target
= control target key end

     0   :  { %11 = vsyncpa [#allocation3], 0  ;;  %s2276_s0 = inlined_call_operand.vmem [shape: f32[2,32,256], index: 0, kind: input, shape index: {}]   ;;  %s2277_s1 = inlined_call_operand.vmem [shape: f32[128,32], index: 1, kind: input, shape index: {}]   ;;  %s2278_s2 = inlined_call_operand.vmem [shape: f32[32,128], index: 2, kind: input, shape index: {}]   ;;  %s2279_s3 = inlined_call_operand.vmem [shape: f32[128,1], index: 3, kind: input, shape index: {}]   ;;  %s2280_s4 = inlined_call_operand.hbm [shape: s32[2,1,256], index: 4, kind: output, shape index: {0}]   ;;  %s2281_s5 = inlined_call_operand.hbm [shape: f32[2,32,256], index: 5, kind: output, shape index: {1}]  }
   0x1   :  { %13 = vsyncpa [#allocation3 + $0x1], 0 }
   0x2   :  { %14 = vsyncpa [#allocation5], 0 }
   0x3   :  { %16 = vsyncpa [#allocation5 + $0x1], 0  ;;  %s1557_s18 = smov 0   ;;  %s1559_s19 = smov 0  }
   0x4   :  { %s1561_s20 = smov 0   ;;  %s1563_s21 = smov 0  }
   0x5   :  { %s1565_s22 = smov 0   ;;  %s1567_s23 = smov 0  }
   0x6 LB: > { %s1199_s24 = sadd.s32 4294967295, %s1517_s23   ;;  %s1200_s25 = sadd.s32 4294967294, %s1517_s23   ;;  %s1517_s23 = sphi %s1567_s23, %s22_s23   ;;  %s1513_s22 = sphi %s1565_s22, %s2296_s22   ;;  %s1509_s21 = sphi %s1563_s21, %s2295_s21   ;;  %s1505_s20 = sphi %s1561_s20, %s2294_s20   ;;  %s1501_s19 = sphi %s1559_s19, %s2293_s19   ;;  %s1497_s18 = sphi %s1557_s18, %s2292_s18  }
   0x7   : > { %s34_s26 = sadd.s32 1, %s1513_s22  ;;  %s134_s27 = sadd.s32 1, %s1505_s20 }
   0x8   : > { %p36_p0 = scmp.ge.s32.totalorder %s34_s26, 2  ;;  %p144_p1 = scmp.ne.s32.totalorder %s1505_s20, %s1501_s19 }
   0x9   : > { %p145_p2 = scmp.eq.s32.totalorder %s1199_s24, 1  ;;  %p150_p3 = scmp.ne.s32.totalorder %s1501_s19, %s1497_s18 }
   0xa   : > { %s2298_s26 = smov (%p36_p0, %s34_s26), 0  ;;  %p151_p5 = scmp.eq.s32.totalorder %s1200_s25, 1 }
   0xb   : > { %p1597_p4 = por %p145_p2, %p144_p1  ;;  %s129_s29 = ssub.s32 %s1513_s22, %s2298_s26 }
   0xc   : > { %p1203_p6 = scmp.ge.s32.totalorder %s1517_s23, 1  ;;  %p132_p7 = scmp.eq.s32.totalorder %s129_s29, 0 }
   0xd   : > { %p1604_p8 = por %p151_p5, %p150_p3  ;;  %p219_p9 = scmp.lt.s32.totalorder %s1517_s23, 3 }
   0xe   : > { %s1610_s6 = scalar_select %p132_p7, %s1505_s20, %s134_s27  }
   0xf   : > { %p220_p10 = pnand %p1203_p6, %p219_p9 }
  0x10   : > { %p257_p11 = scmp.lt.s32.totalorder (!%p220_p10), %s1509_s21, 1  ;;  %v1519_v0 = vmov (!%p220_p10), 0.0   ;;  %v1520_v1 = vmov (!%p220_p10), 0   ;;  %v296_v2 = vld [vmem:[%s2279_s3] sm:$0xff] (!%p220_p10)  ;;  %v297_v3 = vld [vmem:[%s2279_s3 + $0x8] sm:$0xff] (!%p220_p10)  ;;  %v298_v15 = vld [vmem:[%s2279_s3 + $0x10] sm:$0xff] (!%p220_p10) }
  0x11   : > { %223 = sbr.rel (%p220_p10) target bundleno = 651 (0x28b), region = 36  ;;  %425 = vmatprep.mubr.f32.mxu0 (!%p220_p10), %v1519_v0  ;;  %1015 = vmatprep.mubr.f32.mxu1 (!%p220_p10), %v1519_v0  ;;  %v299_v17 = vld [vmem:[%s2279_s3 + $0x18] sm:$0xff] (!%p220_p10)  ;;  %v300_v18 = vld [vmem:[%s2279_s3 + $0x20] sm:$0xff] (!%p220_p10)  ;;  %vm312_vm0 = vcmask (!%p220_p10), 261120   ;;  %v301_v20 = vld [vmem:[%s2279_s3 + $0x28] sm:$0xff] (!%p220_p10)  ;;  %s2103_s16 = sand.u32 (!%p220_p10), 1, %s1501_s19  }
  0x12   : > { %1405 = vset.pattern.permute.xlu0 (!%p220_p10), %v1520_v1  ;;  %1406 = vset.pattern.permute.xlu1 (!%p220_p10), %v1520_v1  ;;  %v276_v19 = vld [vmem:[%s2277_s1] sm:$0xff] (!%p220_p10)  ;;  %v302_v21 = vld [vmem:[%s2279_s3 + $0x30] sm:$0xff] (!%p220_p10)  ;;  %v277_v22 = vld [vmem:[%s2277_s1 + $0x8] sm:$0xff] (!%p220_p10)  ;;  %s1204_s17 = sshll.u32 (!%p220_p10), %s2103_s16, 1  ;;  %s1297_s12 = sshll.u32 (!%p220_p10), %s1509_s21, 5 }
  0x13   : > { %524 = vperm.xlu0 (!%p220_p10), %1405, %v296_v2   ;;  %534 = vperm.xlu1 (!%p220_p10), %1406, %v298_v15   ;;  %v303_v23 = vld [vmem:[%s2279_s3 + $0x38] sm:$0xff] (!%p220_p10)  ;;  %v304_v24 = vld [vmem:[%s2279_s3 + $0x40] sm:$0xff] (!%p220_p10)  ;;  %v278_v25 = vld [vmem:[%s2277_s1 + $0x10] sm:$0xff] (!%p220_p10)  ;;  %s2131_s24 = scalar_lea.vmem (!%p220_p10), [#allocation2], %s1204_s17  ;;  %s2200_s15 = scalar_lea.hbm (!%p220_p10), %s2280_s4, %s1297_s12 }
  0x14   : > { %v305_v26 = vld [vmem:[%s2279_s3 + $0x48] sm:$0xff] (!%p220_p10)  ;;  %v306_v27 = vld [vmem:[%s2279_s3 + $0x50] sm:$0xff] (!%p220_p10)  ;;  %v279_v28 = vld [vmem:[%s2277_s1 + $0x18] sm:$0xff] (!%p220_p10)  ;;  %s1070_s17 = sshll.u32 (!%p220_p10), %s2131_s24, 4  ;;  %s1049_s25 = scalar_lea.sflag (!%p220_p10), [#allocation3], %s2103_s16  ;;  %s1071_s17 = int_to_ptr.vmem [resolvable:$true] %s1070_s17 }
  0x15   : > { %v307_v29 = vld [vmem:[%s2279_s3 + $0x58] sm:$0xff] (!%p220_p10)  ;;  %v308_v30 = vld [vmem:[%s2279_s3 + $0x60] sm:$0xff] (!%p220_p10)  ;;  %v309_v32 = vld [vmem:[%s2279_s3 + $0x68] sm:$0xff] (!%p220_p10)  ;;  %s1407_s27 = scalar_lea.vmem (!%p220_p10), %s1071_s17, 32  ;;  %s1523_s29 = smov (!%p220_p10), [#allocation2]  }
  0x16   : > { %v280_v31 = vld [vmem:[%s2277_s1 + $0x20] sm:$0xff] (!%p220_p10)  ;;  %v310_v33 = vld [vmem:[%s2279_s3 + $0x70] sm:$0xff] (!%p220_p10)  ;;  %v281_v34 = vld [vmem:[%s2277_s1 + $0x28] sm:$0xff] (!%p220_p10)  ;;  %p1408_p12 = scmp.ne.s32.totalorder (!%p220_p10), %s1071_s17, %s1407_s27 }
  0x17   : > { %529 = vperm.xlu0 (!%p220_p10), %1405, %v297_v3   ;;  %539 = vperm.xlu1 (!%p220_p10), %1406, %v299_v17   ;;  %v311_v35 = vld [vmem:[%s2279_s3 + $0x78] sm:$0xff] (!%p220_p10)  ;;  %v282_v36 = vld [vmem:[%s2277_s1 + $0x30] sm:$0xff] (!%p220_p10)  ;;  %v284_v38 = vld [vmem:[%s2277_s1 + $0x40] sm:$0xff] (!%p220_p10) }
  0x18   : > { %s258_s7 = scalar_select %p257_p11, %s1509_s21, 1  ;;  %v283_v37 = vld [vmem:[%s2277_s1 + $0x38] sm:$0xff]  ;;  %v285_v39 = vld [vmem:[%s2277_s1 + $0x48] sm:$0xff]  ;;  %v286_v40 = vld [vmem:[%s2277_s1 + $0x50] sm:$0xff] }
  0x19   : > { %v287_v41 = vld [vmem:[%s2277_s1 + $0x58] sm:$0xff]  ;;  %v288_v42 = vld [vmem:[%s2277_s1 + $0x60] sm:$0xff]  ;;  %v289_v43 = vld [vmem:[%s2277_s1 + $0x68] sm:$0xff]  ;;  %p1409_p13 = pnand %p1408_p12, %p1597_p4 }
  0x1a   : > { %s1296_s8 = sshll.u32 %s258_s7, 6  ;;  %v290_v44 = vld [vmem:[%s2277_s1 + $0x70] sm:$0xff]  ;;  %v291_v45 = vld [vmem:[%s2277_s1 + $0x78] sm:$0xff]  ;;  %s1411_s7 = sshll.u32 %s1523_s29, 4  ;;  %s1412_s7 = int_to_ptr.vmem [resolvable:$false] %s1411_s7 }
  0x1b   : > { %s264_s11 = scalar_lea.vmem %s2276_s0, %s1296_s8  ;;  %544 = vperm.xlu0 %1405, %v300_v18   ;;  %549 = vperm.xlu1 %1406, %v301_v20   ;;  %p1410_p0 = pneg %p1409_p13 }
  0x1c   : > { %v269_v4 = vld [vmem:[%s264_s11 + $0x8] sm:$0xff]  ;;  %v271_v5 = vld [vmem:[%s264_s11 + $0x18] sm:$0xff]  ;;  %v268_v6 = vld [vmem:[%s264_s11] sm:$0xff]  ;;  %s1413_s8 = scalar_lea.vmem %s1412_s7, 64  ;;  %p1414_p1 = scmp.lt.s32.totalorder %s1071_s17, %s1412_s7 }
  0x1d   : > { %v1299_v7 = vpack.c.bf16 %v271_v5, %v269_v4  ;;  %v270_v8 = vld [vmem:[%s264_s11 + $0x10] sm:$0xff]  ;;  %v273_v9 = vld [vmem:[%s264_s11 + $0x28] sm:$0xff]  ;;  %v275_v10 = vld [vmem:[%s264_s11 + $0x38] sm:$0xff]  ;;  %p1415_p2 = scmp.lt.s32.totalorder %s1413_s8, %s1407_s27 }
  0x1e   : > { %v1301_v11 = vpack.c.bf16 %v270_v8, %v268_v6  ;;  %v1303_v12 = vpack.c.bf16 %v275_v10, %v273_v9  ;;  %v272_v13 = vld [vmem:[%s264_s11 + $0x20] sm:$0xff]  ;;  %v274_v14 = vld [vmem:[%s264_s11 + $0x30] sm:$0xff] }
  0x1f   : > { %1300 = vmatprep.subr.bf16.mxu0 %v1299_v7  ;;  %v1305_v16 = vpack.c.bf16 %v274_v14, %v272_v13  ;;  %554 = vperm.xlu0 %1405, %v302_v21   ;;  %p1416_p3 = por %p1415_p2, %p1414_p1 }
  0x20   : > { %1302 = vmatpush1.bf16.msra.mxu0 %v1301_v11  ;;  %559 = vperm.xlu1 %1406, %v303_v23  }
  0x21   : > { %1304 = vmatprep.subr.bf16.mxu0 %v1303_v12  ;;  %p1417_p5 = pnand %p1416_p3, %p1410_p0 }
  0x23   : > { %564 = vperm.xlu0 %1405, %v304_v24  }
  0x24   : > { %1306 = vmatpush1.bf16.msra.mxu0 %v1305_v16  ;;  %569 = vperm.xlu1 %1406, %v305_v26  }
  0x27   : > { %1208 = vmatmul.mubr.msk.f32.vlgmr.msra.gmra.mrb[0].mxu0 %vm312_vm0, %v276_v19  ;;  %574 = vperm.xlu0 %1405, %v306_v27  }
  0x28   : > { %431 = vmatprep.mubr.f32.mxu0 %v1519_v0  ;;  %579 = vperm.xlu1 %1406, %v307_v29  }
  0x2b   : > { %1209 = vmatmul.mubr.msk.f32.gmra.mrb[2].mxu0 %vm312_vm0, %v277_v22  ;;  %584 = vperm.xlu0 %1405, %v308_v30  }
  0x2c   : > { %437 = vmatprep.mubr.f32.mxu0 %v1519_v0  ;;  %589 = vperm.xlu1 %1406, %v309_v32  }
  0x2f   : > { %1210 = vmatmul.mubr.msk.f32.gmra.mrb[4].mxu0 %vm312_vm0, %v278_v25  ;;  %594 = vperm.xlu0 %1405, %v310_v33  }
  0x30   : > { %443 = vmatprep.mubr.f32.mxu0 %v1519_v0  ;;  %599 = vperm.xlu1 %1406, %v311_v35  }
  0x33   : > { %1211 = vmatmul.mubr.msk.f32.gmra.mrb[6].mxu0 %vm312_vm0, %v279_v28 }
  0x34   : > { %449 = vmatprep.mubr.f32.mxu0 %v1519_v0 }
  0x37   : > { %1212 = vmatmul.mubr.msk.f32.gmra.mrb[8].mxu0 %vm312_vm0, %v280_v31 }
  0x38   : > { %455 = vmatprep.mubr.f32.mxu0 %v1519_v0 }
  0x3b   : > { %1213 = vmatmul.mubr.msk.f32.gmra.mrb[10].mxu0 %vm312_vm0, %v281_v34 }
  0x3c   : > { %461 = vmatprep.mubr.f32.mxu0 %v1519_v0 }
  0x3f   : > { %1214 = vmatmul.mubr.msk.f32.gmra.mrb[12].mxu0 %vm312_vm0, %v282_v36 }
  0x40   : > { %467 = vmatprep.mubr.f32.mxu0 %v1519_v0 }
  0x43   : > { %1215 = vmatmul.mubr.msk.f32.gmra.mrb[14].mxu0 %vm312_vm0, %v283_v37 }
  0x44   : > { %473 = vmatprep.mubr.f32.mxu0 %v1519_v0 }
  0x47   : > { %1216 = vmatmul.mubr.msk.f32.gmra.mrb[16].mxu0 %vm312_vm0, %v284_v38 }
  0x48   : > { %479 = vmatprep.mubr.f32.mxu0 %v1519_v0 }
  0x4b   : > { %1217 = vmatmul.mubr.msk.f32.gmra.mrb[18].mxu0 %vm312_vm0, %v285_v39 }
  0x4c   : > { %485 = vmatprep.mubr.f32.mxu0 %v1519_v0 }
  0x4f   : > { %1218 = vmatmul.mubr.msk.f32.gmra.mrb[20].mxu0 %vm312_vm0, %v286_v40 }
  0x50   : > { %491 = vmatprep.mubr.f32.mxu0 %v1519_v0 }
  0x53   : > { %1219 = vmatmul.mubr.msk.f32.gmra.mrb[22].mxu0 %vm312_vm0, %v287_v41 }
  0x54   : > { %497 = vmatprep.mubr.f32.mxu0 %v1519_v0 }
  0x57   : > { %1220 = vmatmul.mubr.msk.f32.gmra.mrb[24].mxu0 %vm312_vm0, %v288_v42 }
  0x58   : > { %503 = vmatprep.mubr.f32.mxu0 %v1519_v0 }
  0x5b   : > { %1221 = vmatmul.mubr.msk.f32.gmra.mrb[26].mxu0 %vm312_vm0, %v289_v43 }
  0x5c   : > { %509 = vmatprep.mubr.f32.mxu0 %v1519_v0 }
  0x5f   : > { %1222 = vmatmul.mubr.msk.f32.gmra.mrb[28].mxu0 %vm312_vm0, %v290_v44 }
  0x60   : > { %515 = vmatprep.mubr.f32.mxu0 %v1519_v0 }
  0x63   : > { %1223 = vmatmul.mubr.msk.f32.gmra.mrb[30].mxu0 %vm312_vm0, %v291_v45 }
  0x92   : > { %v525_v48 = vpop.permute.xlu0 %524  ;;  %v535_v51 = vpop.permute.xlu1 %534 }
  0x96   : > { %v530_v57 = vpop.permute.xlu0 %529  ;;  %v540_v60 = vpop.permute.xlu1 %539 }
  0x9a   : > { %v545_v6 = vpop.permute.xlu0 %544  ;;  %v550_v13 = vpop.permute.xlu1 %549 }
  0x9e   : > { %v555_v20 = vpop.permute.xlu0 %554 }
  0x9f   : > { %v560_v27 = vpop.permute.xlu1 %559 }
  0xa2   : > { %v565_v34 = vpop.permute.xlu0 %564 }
  0xa3   : > { %v570_v41 = vpop.permute.xlu1 %569 }
  0xfa   : > { %v427_v46 = vpop.f32.mrb[0].mxu0 }
  0xfb   : > { %v429_v47 = vpop.f32.mrb[1].mxu0  ;;  %v1746_v53 = vsub.f32 %v427_v46, %v525_v48 }
  0xfc   : > { %v1750_v56 = vsub.f32 %v429_v47, %v525_v48  ;;  %v575_v48 = vpop.permute.xlu0 %574 }
  0xfe   : > { %v433_v49 = vpop.f32.mrb[2].mxu0 }
  0xff   : > { %v435_v50 = vpop.f32.mrb[3].mxu0  ;;  %v1758_v63 = vsub.f32 %v433_v49, %v530_v57 }
 0x100   : > { %v1762_v3 = vsub.f32 %v435_v50, %v530_v57 }
 0x102   : > { %v439_v52 = vpop.f32.mrb[4].mxu0 }
 0x103   : > { %v1748_v54 = vsub.f32 %v439_v52, %v535_v51  ;;  %v441_v55 = vpop.f32.mrb[5].mxu0 }
 0x104   : > { %v1752_v58 = vsub.f32 %v441_v55, %v535_v51 }
 0x105   : > { %v634_v59 = vmax.f32 %v1746_v53, %v1748_v54 }
 0x106   : > { %v655_v61 = vmax.f32 %v1750_v56, %v1752_v58  ;;  %v445_v62 = vpop.f32.mrb[6].mxu0 }
 0x107   : > { %v1760_v1 = vsub.f32 %v445_v62, %v540_v60  ;;  %v447_v2 = vpop.f32.mrb[7].mxu0 }
 0x108   : > { %v1764_v4 = vsub.f32 %v447_v2, %v540_v60 }
 0x109   : > { %v635_v5 = vmax.f32 %v1758_v63, %v1760_v1 }
 0x10a   : > { %v656_v7 = vmax.f32 %v1762_v3, %v1764_v4  ;;  %v451_v8 = vpop.f32.mrb[8].mxu0 }
 0x10b   : > { %v1770_v9 = vsub.f32 %v451_v8, %v545_v6  ;;  %v453_v10 = vpop.f32.mrb[9].mxu0 }
 0x10c   : > { %v1772_v11 = vsub.f32 %v453_v10, %v545_v6 }
 0x10d   : > { %v636_v12 = vmax.f32 %v634_v59, %v1770_v9  ;;  %v580_v59 = vpop.permute.xlu1 %579 }
 0x10e   : > { %v657_v14 = vmax.f32 %v655_v61, %v1772_v11  ;;  %v457_v15 = vpop.f32.mrb[10].mxu0 }
 0x10f   : > { %v1776_v16 = vsub.f32 %v457_v15, %v550_v13  ;;  %v459_v17 = vpop.f32.mrb[11].mxu0 }
 0x110   : > { %v1778_v18 = vsub.f32 %v459_v17, %v550_v13 }
 0x111   : > { %v637_v19 = vmax.f32 %v635_v5, %v1776_v16  ;;  %v590_v17 = vpop.permute.xlu1 %589 }
 0x112   : > { %v658_v21 = vmax.f32 %v656_v7, %v1778_v18  ;;  %v463_v22 = vpop.f32.mrb[12].mxu0  ;;  %v585_v7 = vpop.permute.xlu0 %584 }
 0x113   : > { %v1782_v23 = vsub.f32 %v463_v22, %v555_v20  ;;  %v465_v24 = vpop.f32.mrb[13].mxu0 }
 0x114   : > { %v1784_v25 = vsub.f32 %v465_v24, %v555_v20 }
 0x115   : > { %v638_v26 = vmax.f32 %v636_v12, %v1782_v23 }
 0x116   : > { %v659_v28 = vmax.f32 %v657_v14, %v1784_v25  ;;  %v469_v29 = vpop.f32.mrb[14].mxu0 }
 0x117   : > { %v1788_v30 = vsub.f32 %v469_v29, %v560_v27  ;;  %v471_v31 = vpop.f32.mrb[15].mxu0 }
 0x118   : > { %v1790_v32 = vsub.f32 %v471_v31, %v560_v27  ;;  %v595_v27 = vpop.permute.xlu0 %594 }
 0x119   : > { %v639_v33 = vmax.f32 %v637_v19, %v1788_v30 }
 0x11a   : > { %v660_v35 = vmax.f32 %v658_v21, %v1790_v32  ;;  %v475_v36 = vpop.f32.mrb[16].mxu0 }
 0x11b   : > { %v1794_v37 = vsub.f32 %v475_v36, %v565_v34  ;;  %v477_v38 = vpop.f32.mrb[17].mxu0  ;;  %v600_v36 = vpop.permute.xlu1 %599 }
 0x11c   : > { %v1796_v39 = vsub.f32 %v477_v38, %v565_v34 }
 0x11d   : > { %v640_v40 = vmax.f32 %v638_v26, %v1794_v37 }
 0x11e   : > { %v661_v42 = vmax.f32 %v659_v28, %v1796_v39  ;;  %v481_v43 = vpop.f32.mrb[18].mxu0 }
 0x11f   : > { %v1800_v44 = vsub.f32 %v481_v43, %v570_v41  ;;  %v483_v45 = vpop.f32.mrb[19].mxu0 }
 0x120   : > { %v1802_v46 = vsub.f32 %v483_v45, %v570_v41 }
 0x121   : > { %v641_v47 = vmax.f32 %v639_v33, %v1800_v44 }
 0x122   : > { %v662_v49 = vmax.f32 %v660_v35, %v1802_v46  ;;  %v487_v50 = vpop.f32.mrb[20].mxu0 }
 0x123   : > { %v1806_v51 = vsub.f32 %v487_v50, %v575_v48  ;;  %v489_v52 = vpop.f32.mrb[21].mxu0 }
 0x124   : > { %v1808_v55 = vsub.f32 %v489_v52, %v575_v48  ;;  %v676_v52 = vlaneseq }
 0x125   : > { %v642_v57 = vmax.f32 %v640_v40, %v1806_v51 }
 0x126   : > { %v663_v60 = vmax.f32 %v661_v42, %v1808_v55  ;;  %v493_v61 = vpop.f32.mrb[22].mxu0 }
 0x127   : > { %v1812_v62 = vsub.f32 %v493_v61, %v580_v59  ;;  %v495_v2 = vpop.f32.mrb[23].mxu0 }
 0x128   : > { %v1814_v5 = vsub.f32 %v495_v2, %v580_v59  ;;  %v1843_v2 = vshrl.u32 %v676_v52, 7 }
 0x129   : > { %v643_v6 = vmax.f32 %v641_v47, %v1812_v62 }
 0x12a   : > { %v664_v8 = vmax.f32 %v662_v49, %v1814_v5  ;;  %v499_v10 = vpop.f32.mrb[24].mxu0 }
 0x12b   : > { %v1818_v12 = vsub.f32 %v499_v10, %v585_v7  ;;  %v501_v13 = vpop.f32.mrb[25].mxu0 }
 0x12c   : > { %v1820_v14 = vsub.f32 %v501_v13, %v585_v7  ;;  %v1846_v13 = vadd.s32 8, %v1843_v2 }
 0x12d   : > { %v644_v15 = vmax.f32 %v642_v57, %v1818_v12 }
 0x12e   : > { %v665_v19 = vmax.f32 %v663_v60, %v1820_v14  ;;  %v505_v20 = vpop.f32.mrb[26].mxu0 }
 0x12f   : > { %v1824_v21 = vsub.f32 %v505_v20, %v590_v17  ;;  %v507_v22 = vpop.f32.mrb[27].mxu0  ;;  %v1858_v20 = vadd.s32 40, %v1843_v2 }
 0x130   : > { %v1826_v24 = vsub.f32 %v507_v22, %v590_v17  ;;  %v1852_v17 = vadd.s32 24, %v1843_v2  ;;  %v1861_v22 = vadd.s32 48, %v1843_v2 }
 0x131   : > { %v645_v26 = vmax.f32 %v643_v6, %v1824_v21 }
 0x132   : > { %v666_v28 = vmax.f32 %v664_v8, %v1826_v24  ;;  %v511_v29 = vpop.f32.mrb[28].mxu0 }
 0x133   : > { %v1830_v31 = vsub.f32 %v511_v29, %v595_v27  ;;  %v513_v33 = vpop.f32.mrb[29].mxu0  ;;  %v1872_v29 = vadd.s32 72, %v1843_v2 }
 0x134   : > { %v1832_v34 = vsub.f32 %v513_v33, %v595_v27  ;;  %v1866_v27 = vadd.s32 56, %v1843_v2  ;;  %v1875_v33 = vadd.s32 80, %v1843_v2 }
 0x135   : > { %v646_v35 = vmax.f32 %v644_v15, %v1830_v31  ;;  %v1849_v15 = vadd.s32 16, %v1843_v2 }
 0x136   : > { %v667_v38 = vmax.f32 %v665_v19, %v1832_v34  ;;  %v517_v40 = vpop.f32.mrb[30].mxu0  ;;  %v1855_v19 = vadd.s32 32, %v1843_v2 }
 0x137   : > { %v1836_v41 = vsub.f32 %v517_v40, %v600_v36  ;;  %v519_v42 = vpop.f32.mrb[31].mxu0  ;;  %v1916_v40 = vadd.s32 104, %v1843_v2 }
 0x138   : > { %v1838_v43 = vsub.f32 %v519_v42, %v600_v36  ;;  %v1881_v36 = vadd.s32 96, %v1843_v2  ;;  %v1919_v42 = vadd.s32 112, %v1843_v2 }
 0x139   : > { %v647_v45 = vmax.f32 %v645_v26, %v1836_v41 }
 0x13a   : > { %v668_v47 = vmax.f32 %v666_v28, %v1838_v43  ;;  %v1869_v28 = vadd.s32 64, %v1843_v2 }
 0x13b   : > { %v648_v48 = vmax.f32 %v646_v35, %v647_v45  ;;  %v1878_v35 = vadd.s32 88, %v1843_v2  ;;  %v1922_v45 = vadd.s32 120, %v1843_v2 }
 0x13c   : > { %v669_v49 = vmax.f32 %v667_v38, %v668_v47 }
 0x13d   : > { %v649_v50 = vrot.slane %v648_v48, 4 }
 0x13e   : > { %v670_v57 = vrot.slane %v669_v49, 4 }
 0x13f   : > { %v650_v59 = vmax.f32 %v648_v48, %v649_v50 }
 0x140   : > { %v671_v60 = vmax.f32 %v669_v49, %v670_v57 }
 0x141   : > { %v651_v61 = vrot.slane %v650_v59, 2 }
 0x142   : > { %v672_v6 = vrot.slane %v671_v60, 2 }
 0x143   : > { %v652_v7 = vmax.f32 %v650_v59, %v651_v61 }
 0x144   : > { %v673_v8 = vmax.f32 %v671_v60, %v672_v6 }
 0x145   : > { %v653_v10 = vrot.slane %v652_v7, 1 }
 0x146   : > { %v674_v38 = vrot.slane %v673_v8, 1 }
 0x147   : > { %v1863_v26 = vmax.f32 %v652_v7, %v653_v10 }
 0x148   : > { %v1924_v47 = vmax.f32 %v673_v8, %v674_v38 }
 0x149   : > { %vm693_vm1 = vcmp.eq.f32.partialorder %v1746_v53, %v1863_v26  ;;  %vm695_vm2 = vcmp.eq.f32.partialorder %v1758_v63, %v1863_v26  ;;  %vm697_vm3 = vcmp.eq.f32.partialorder %v1748_v54, %v1863_v26  ;;  %vm699_vm4 = vcmp.eq.f32.partialorder %v1760_v1, %v1863_v26 }
 0x14a   : > { %vm701_vm5 = vcmp.eq.f32.partialorder %v1770_v9, %v1863_v26  ;;  %vm703_vm6 = vcmp.eq.f32.partialorder %v1776_v16, %v1863_v26  ;;  %vm705_vm7 = vcmp.eq.f32.partialorder %v1782_v23, %v1863_v26  ;;  %vm707_vm8 = vcmp.eq.f32.partialorder %v1788_v30, %v1863_v26 }
 0x14b   : > { %vm709_vm9 = vcmp.eq.f32.partialorder %v1794_v37, %v1863_v26  ;;  %vm711_vm10 = vcmp.eq.f32.partialorder %v1800_v44, %v1863_v26  ;;  %vm713_vm11 = vcmp.eq.f32.partialorder %v1806_v51, %v1863_v26  ;;  %vm715_vm12 = vcmp.eq.f32.partialorder %v1812_v62, %v1863_v26 }
 0x14c   : > { %vm717_vm13 = vcmp.eq.f32.partialorder %v1818_v12, %v1863_v26  ;;  %vm719_vm14 = vcmp.eq.f32.partialorder %v1824_v21, %v1863_v26  ;;  %vm721_vm15 = vcmp.eq.f32.partialorder %v1830_v31, %v1863_v26  ;;  %vm723_vm0 = vcmp.eq.f32.partialorder %v1836_v41, %v1863_v26 }
 0x14d   : > { %v725_v48 = vsel %vm693_vm1, %v1843_v2, 128  ;;  %v727_v49 = vsel %vm695_vm2, %v1846_v13, 128  ;;  %v729_v50 = vsel %vm697_vm3, %v1849_v15, 128  ;;  %v731_v57 = vsel %vm699_vm4, %v1852_v17, 128 }
 0x14e   : > { %v733_v53 = vsel %vm701_vm5, %v1855_v19, 128  ;;  %v735_v63 = vsel %vm703_vm6, %v1858_v20, 128  ;;  %v737_v54 = vsel %vm705_vm7, %v1861_v22, 128  ;;  %v739_v1 = vsel %vm707_vm8, %v1866_v27, 128 }
 0x14f   : > { %v741_v9 = vsel %vm709_vm9, %v1869_v28, 128  ;;  %v743_v16 = vsel %vm711_vm10, %v1872_v29, 128  ;;  %v745_v23 = vsel %vm713_vm11, %v1875_v33, 128  ;;  %v747_v30 = vsel %vm715_vm12, %v1878_v35, 128 }
 0x150   : > { %vm757_vm1 = vcmp.lt.s32.totalorder %v725_v48, %v729_v50  ;;  %vm759_vm2 = vcmp.lt.s32.totalorder %v727_v49, %v731_v57  ;;  %vm694_vm3 = vcmp.eq.f32.partialorder %v1750_v56, %v1924_v47  ;;  %vm696_vm4 = vcmp.eq.f32.partialorder %v1762_v3, %v1924_v47 }
 0x151   : > { %v758_v37 = vsel %vm757_vm1, %v725_v48, %v729_v50  ;;  %v760_v44 = vsel %vm759_vm2, %v727_v49, %v731_v57  ;;  %vm710_vm6 = vcmp.eq.f32.partialorder %v1796_v39, %v1924_v47  ;;  %vm718_vm12 = vcmp.eq.f32.partialorder %v1820_v14, %v1924_v47 }
 0x152   : > { %vm761_vm7 = vcmp.lt.s32.totalorder %v758_v37, %v733_v53  ;;  %vm763_vm8 = vcmp.lt.s32.totalorder %v760_v44, %v735_v63  ;;  %vm720_vm9 = vcmp.eq.f32.partialorder %v1826_v24, %v1924_v47  ;;  %v749_v7 = vsel %vm717_vm13, %v1881_v36, 128 }
 0x153   : > { %v762_v51 = vsel %vm761_vm7, %v758_v37, %v733_v53  ;;  %v764_v62 = vsel %vm763_vm8, %v760_v44, %v735_v63  ;;  %vm716_vm8 = vcmp.eq.f32.partialorder %v1814_v5, %v1924_v47  ;;  %v751_v8 = vsel %vm719_vm14, %v1916_v40, 128 }
 0x154   : > { %vm765_vm1 = vcmp.lt.s32.totalorder %v762_v51, %v737_v54  ;;  %vm767_vm2 = vcmp.lt.s32.totalorder %v764_v62, %v739_v1  ;;  %v753_v48 = vsel %vm721_vm15, %v1919_v42, 128  ;;  %v755_v49 = vsel %vm723_vm0, %v1922_v45, 128 }
 0x155   : > { %v766_v59 = vsel %vm765_vm1, %v762_v51, %v737_v54  ;;  %v768_v60 = vsel %vm767_vm2, %v764_v62, %v739_v1  ;;  %vm722_vm1 = vcmp.eq.f32.partialorder %v1832_v34, %v1924_v47  ;;  %vm724_vm2 = vcmp.eq.f32.partialorder %v1838_v43, %v1924_v47 }
 0x156   : > { %vm769_vm11 = vcmp.lt.s32.totalorder %v766_v59, %v741_v9  ;;  %vm771_vm10 = vcmp.lt.s32.totalorder %v768_v60, %v743_v16  ;;  %v726_v21 = vsel %vm694_vm3, %v1843_v2, 128  ;;  %v728_v31 = vsel %vm696_vm4, %v1846_v13, 128 }
 0x157   : > { %v770_v61 = vsel %vm769_vm11, %v766_v59, %v741_v9  ;;  %v772_v6 = vsel %vm771_vm10, %v768_v60, %v743_v16  ;;  %vm2284_vm15 = vcmp.eq.f32.partialorder %v1752_v58, %v1924_v47  ;;  %vm2285_vm0 = vcmp.eq.f32.partialorder %v1764_v4, %v1924_v47 }
 0x158   : > { %vm773_vm7 = vcmp.lt.s32.totalorder %v770_v61, %v745_v23  ;;  %vm775_vm5 = vcmp.lt.s32.totalorder %v772_v6, %v747_v30  ;;  %v730_v41 = vsel %vm2284_vm15, %v1849_v15, 128  ;;  %v732_v26 = vsel %vm2285_vm0, %v1852_v17, 128 }
 0x159   : > { %v774_v10 = vsel %vm773_vm7, %v770_v61, %v745_v23  ;;  %v776_v38 = vsel %vm775_vm5, %v772_v6, %v747_v30  ;;  %vm2286_vm4 = vcmp.eq.f32.partialorder %v1772_v11, %v1924_v47  ;;  %vm796_vm5 = vcmp.lt.s32.totalorder %v726_v21, %v730_v41 }
 0x15a   : > { %vm777_vm10 = vcmp.lt.s32.totalorder %v774_v10, %v749_v7  ;;  %vm779_vm11 = vcmp.lt.s32.totalorder %v776_v38, %v751_v8  ;;  %v734_v3 = vsel %vm2286_vm4, %v1855_v19, 128  ;;  %vm798_vm7 = vcmp.lt.s32.totalorder %v728_v31, %v732_v26 }
 0x15b   : > { %v778_v12 = vsel %vm777_vm10, %v774_v10, %v749_v7  ;;  %v780_v50 = vsel %vm779_vm11, %v776_v38, %v751_v8  ;;  %vm2287_vm10 = vcmp.eq.f32.partialorder %v1778_v18, %v1924_v47  ;;  %v797_v54 = vsel %vm796_vm5, %v726_v21, %v730_v41 }
 0x15c   : > { %vm781_vm13 = vcmp.lt.s32.totalorder %v778_v12, %v753_v48  ;;  %vm783_vm14 = vcmp.lt.s32.totalorder %v780_v50, %v755_v49  ;;  %v736_v58 = vsel %vm2287_vm10, %v1858_v20, 128  ;;  %v799_v4 = vsel %vm798_vm7, %v728_v31, %v732_v26 }
 0x15d   : > { %v782_v57 = vsel %vm781_vm13, %v778_v12, %v753_v48  ;;  %v784_v56 = vsel %vm783_vm14, %v780_v50, %v755_v49  ;;  %vm2288_vm11 = vcmp.eq.f32.partialorder %v1784_v25, %v1924_v47  ;;  %vm800_vm13 = vcmp.lt.s32.totalorder %v797_v54, %v734_v3 }
 0x15e   : > { %vm785_vm3 = vcmp.lt.s32.totalorder %v782_v57, %v784_v56  ;;  %v738_v1 = vsel %vm2288_vm11, %v1861_v22, 128  ;;  %vm802_vm14 = vcmp.lt.s32.totalorder %v799_v4, %v736_v58  ;;  %vm2289_vm0 = vcmp.eq.f32.partialorder %v1790_v32, %v1924_v47 }
 0x15f   : > { %v786_v53 = vsel %vm785_vm3, %v782_v57, %v784_v56  ;;  %v740_v11 = vsel %vm2289_vm0, %v1866_v27, 128  ;;  %v801_v9 = vsel %vm800_vm13, %v797_v54, %v734_v3  ;;  %v803_v16 = vsel %vm802_vm14, %v799_v4, %v736_v58 }
 0x160   : > { %v787_v63 = vrot.slane %v786_v53, 4  ;;  %vm804_vm3 = vcmp.lt.s32.totalorder %v801_v9, %v738_v1  ;;  %vm806_vm4 = vcmp.lt.s32.totalorder %v803_v16, %v740_v11  ;;  %v742_v18 = vsel %vm710_vm6, %v1869_v28, 128 }
 0x161   : > { %vm2290_vm5 = vcmp.eq.f32.partialorder %v1802_v46, %v1924_v47  ;;  %v805_v30 = vsel %vm804_vm3, %v801_v9, %v738_v1  ;;  %v807_v37 = vsel %vm806_vm4, %v803_v16, %v740_v11  ;;  %vm2291_vm7 = vcmp.eq.f32.partialorder %v1808_v55, %v1924_v47 }
 0x162   : > { %vm788_vm15 = vcmp.lt.s32.totalorder %v786_v53, %v787_v63  ;;  %v744_v25 = vsel %vm2290_vm5, %v1872_v29, 128  ;;  %v746_v32 = vsel %vm2291_vm7, %v1875_v33, 128  ;;  %vm808_vm10 = vcmp.lt.s32.totalorder %v805_v30, %v742_v18 }
 0x163   : > { %v789_v23 = vsel %vm788_vm15, %v786_v53, %v787_v63  ;;  %vm810_vm11 = vcmp.lt.s32.totalorder %v807_v37, %v744_v25  ;;  %v748_v39 = vsel %vm716_vm8, %v1878_v35, 128  ;;  %v809_v51 = vsel %vm808_vm10, %v805_v30, %v742_v18 }
 0x164   : > { %v790_v44 = vrot.slane %v789_v23, 2  ;;  %v811_v62 = vsel %vm810_vm11, %v807_v37, %v744_v25  ;;  %vm812_vm6 = vcmp.lt.s32.totalorder %v809_v51, %v746_v32  ;;  %v750_v46 = vsel %vm718_vm12, %v1881_v36, 128 }
 0x165   : > { %vm814_vm13 = vcmp.lt.s32.totalorder %v811_v62, %v748_v39  ;;  %v752_v55 = vsel %vm720_vm9, %v1916_v40, 128  ;;  %v813_v59 = vsel %vm812_vm6, %v809_v51, %v746_v32  ;;  %v754_v5 = vsel %vm722_vm1, %v1919_v42, 128 }
 0x166   : > { %v815_v60 = vsel %vm814_vm13, %v811_v62, %v748_v39  ;;  %vm816_vm8 = vcmp.lt.s32.totalorder %v813_v59, %v750_v46  ;;  %vm791_vm15 = vcmp.lt.s32.totalorder %v789_v23, %v790_v44  ;;  %v756_v14 = vsel %vm724_vm2, %v1922_v45, 128 }
 0x167   : > { %vm818_vm14 = vcmp.lt.s32.totalorder %v815_v60, %v752_v55  ;;  %v817_v61 = vsel %vm816_vm8, %v813_v59, %v750_v46  ;;  %v792_v8 = vsel %vm791_vm15, %v789_v23, %v790_v44  ;;  %v1521_v12 = vmov 1966171168  }
 0x168   : > { %v819_v6 = vsel %vm818_vm14, %v815_v60, %v752_v55  ;;  %vm820_vm12 = vcmp.lt.s32.totalorder %v817_v61, %v754_v5  ;;  %v793_v34 = vrot.slane %v792_v8, 1  ;;  %v837_v43 = vunpack.c.l.s4 %v1521_v12 }
 0x169   : > { %vm822_vm0 = vcmp.lt.s32.totalorder %v819_v6, %v756_v14  ;;  %v821_v24 = vsel %vm820_vm12, %v817_v61, %v754_v5  ;;  %v1522_v26 = vmov 1.0|1.0  }
 0x16a   : > { %v823_v7 = vsel %vm822_vm0, %v819_v6, %v756_v14  ;;  %vm794_vm3 = vcmp.lt.s32.totalorder %v792_v8, %v793_v34  ;;  %v838_v31 = vunpack.c.0.s8 %v837_v43 }
 0x16b   : > { %vm824_vm9 = vcmp.lt.s32.totalorder %v821_v24, %v823_v7  ;;  %v2086_v50 = vsel %vm794_vm3, %v792_v8, %v793_v34 }
 0x16c   : > { %v825_v10 = vsel %vm824_vm9, %v821_v24, %v823_v7  ;;  %vm855_vm5 = vcmp.eq.s32.totalorder %v1843_v2, %v2086_v50  ;;  %vm857_vm7 = vcmp.eq.s32.totalorder %v1846_v13, %v2086_v50  ;;  %v841_v57 = vsub.s32 %v838_v31, %v1843_v2 }
 0x16d   : > { %v826_v38 = vrot.slane %v825_v10, 4  ;;  %vm1309_vm14 = vmpackc.low %vm857_vm7, %vm855_vm5  ;;  %vm859_vm12 = vcmp.eq.s32.totalorder %v1849_v15, %v2086_v50  ;;  %vm861_vm0 = vcmp.eq.s32.totalorder %v1852_v17, %v2086_v50  ;;  %vm865_vm5 = vcmp.eq.s32.totalorder %v1858_v20, %v2086_v50 }
 0x16e   : > { %vm1313_vm3 = vmpackc.low %vm861_vm0, %vm859_vm12  ;;  %vm852_vm7 = vcmp.lt.s32.totalorder %v676_v52, 256  ;;  %v292_v52 = vld [vmem:[%s2278_s2] sm:$0xff] }
 0x16f   : > { %vm827_vm1 = vcmp.lt.s32.totalorder %v825_v10, %v826_v38 }
 0x170   : > { %v828_v48 = vsel %vm827_vm1, %v825_v10, %v826_v38 }
 0x171   : > { %v829_v49 = vrot.slane %v828_v48, 2 }
 0x173   : > { %vm830_vm4 = vcmp.lt.s32.totalorder %v828_v48, %v829_v49 }
 0x174   : > { %v831_v47 = vsel %vm830_vm4, %v828_v48, %v829_v49 }
 0x175   : > { %v832_v21 = vrot.slane %v831_v47, 1 }
 0x177   : > { %vm833_vm2 = vcmp.lt.s32.totalorder %v831_v47, %v832_v21 }
 0x178   : > { %v2088_v41 = vsel %vm833_vm2, %v831_v47, %v832_v21  ;;  %vm863_vm2 = vcmp.eq.s32.totalorder %v1855_v19, %v2086_v50 }
 0x179   : > { %vm856_vm10 = vcmp.eq.s32.totalorder %v1843_v2, %v2088_v41  ;;  %vm858_vm11 = vcmp.eq.s32.totalorder %v1846_v13, %v2088_v41  ;;  %vm860_vm6 = vcmp.eq.s32.totalorder %v1849_v15, %v2088_v41  ;;  %vm862_vm13 = vcmp.eq.s32.totalorder %v1852_v17, %v2088_v41  ;;  %v293_v17 = vld [vmem:[%s2278_s2 + $0x8] sm:$0xff] }
 0x17a   : > { %vm1307_vm8 = vmpackc.low %vm858_vm11, %vm856_vm10  ;;  %vm864_vm9 = vcmp.eq.s32.totalorder %v1855_v19, %v2088_v41  ;;  %vm866_vm1 = vcmp.eq.s32.totalorder %v1858_v20, %v2088_v41  ;;  %v835_v2 = vcombine.low %v2086_v50, %v2088_v41  ;;  %vm868_vm10 = vcmp.eq.s32.totalorder %v1861_v22, %v2088_v41  ;;  %v294_v19 = vld [vmem:[%s2278_s2 + $0x10] sm:$0xff]  ;;  %v295_v20 = vld [vmem:[%s2278_s2 + $0x18] sm:$0xff] }
 0x17b   : > { %1308 = vmatprep.subr.msk.bf16.mxu1 %vm1307_vm8, %v1522_v26  ;;  %vm1311_vm15 = vmpackc.low %vm862_vm13, %vm860_vm6  ;;  %vm870_vm11 = vcmp.eq.s32.totalorder %v1866_v27, %v2088_v41  ;;  %vm867_vm8 = vcmp.eq.s32.totalorder %v1861_v22, %v2086_v50  ;;  %vm874_vm12 = vcmp.eq.s32.totalorder %v1872_v29, %v2088_v41 }
 0x17c   : > { %1310 = vmatpush1.bf16.msk.msra.mxu1 %vm1309_vm14, %v1522_v26  ;;  %v842_v13 = vrot.slane %v835_v2, %v841_v57  ;;  %vm1315_vm4 = vmpackc.low %vm866_vm1, %vm864_vm9  ;;  %vm869_vm14 = vcmp.eq.s32.totalorder %v1866_v27, %v2086_v50  ;;  %vm871_vm1 = vcmp.eq.s32.totalorder %v1869_v28, %v2086_v50 }
 0x17d   : > { %1312 = vmatprep.subr.msk.bf16.mxu1 %vm1311_vm15, %v1522_v26  ;;  %vm1317_vm6 = vmpackc.low %vm865_vm5, %vm863_vm2  ;;  %vm872_vm15 = vcmp.eq.s32.totalorder %v1869_v28, %v2088_v41  ;;  %vm878_vm2 = vcmp.eq.s32.totalorder %v1878_v35, %v2088_v41 }
 0x17e   : > { %v849_v15 = vrot.slane %v842_v13, %v841_v57  ;;  %vm1319_vm13 = vmpackc.low %vm870_vm11, %vm868_vm10  ;;  %vm875_vm10 = vcmp.eq.s32.totalorder %v1875_v33, %v2086_v50  ;;  %vm877_vm11 = vcmp.eq.s32.totalorder %v1878_v35, %v2086_v50 }
 0x17f   : > { %vm1321_vm0 = vmpackc.low %vm869_vm14, %vm867_vm8 }
 0x180   : > { %1314 = vmatpush1.bf16.msk.msra.mxu1 %vm1313_vm3, %v1522_v26  ;;  %854 = vst.msk [vmem:[%s2131_s24] sm:$0x3] %vm852_vm7, %v849_v15  ;;  %vm1323_vm9 = vmpackc.low %vm874_vm12, %vm872_vm15  ;;  %vm873_vm3 = vcmp.eq.s32.totalorder %v1872_v29, %v2086_v50  ;;  %vm879_vm15 = vcmp.eq.s32.totalorder %v1881_v36, %v2086_v50  ;;  %vm881_vm12 = vcmp.eq.s32.totalorder %v1916_v40, %v2086_v50 }
 0x181   : > { %1316 = vmatprep.subr.msk.bf16.mxu1 %vm1315_vm4, %v1522_v26  ;;  %vm876_vm4 = vcmp.eq.s32.totalorder %v1875_v33, %v2088_v41  ;;  %vm1325_vm5 = vmpackc.low %vm873_vm3, %vm871_vm1 }
 0x182   : > { %vm1327_vm7 = vmpackc.low %vm878_vm2, %vm876_vm4  ;;  %vm883_vm4 = vcmp.eq.s32.totalorder %v1919_v42, %v2086_v50  ;;  %vm885_vm2 = vcmp.eq.s32.totalorder %v1922_v45, %v2086_v50 }
 0x183   : > { %vm1329_vm8 = vmpackc.low %vm877_vm11, %vm875_vm10 }
 0x184   : > { %1318 = vmatpush1.bf16.msk.msra.mxu1 %vm1317_vm6, %v1522_v26  ;;  %vm880_vm6 = vcmp.eq.s32.totalorder %v1881_v36, %v2088_v41  ;;  %vm1333_vm1 = vmpackc.low %vm881_vm12, %vm879_vm15 }
 0x185   : > { %1320 = vmatprep.subr.msk.bf16.mxu1 %vm1319_vm13, %v1522_v26  ;;  %vm882_vm13 = vcmp.eq.s32.totalorder %v1916_v40, %v2088_v41 }
 0x186   : > { %vm1331_vm14 = vmpackc.low %vm882_vm13, %vm880_vm6 }
 0x188   : > { %1322 = vmatpush1.bf16.msk.msra.mxu1 %vm1321_vm0, %v1522_v26  ;;  %vm884_vm0 = vcmp.eq.s32.totalorder %v1919_v42, %v2088_v41 }
 0x189   : > { %1324 = vmatprep.subr.msk.bf16.mxu1 %vm1323_vm9, %v1522_v26  ;;  %vm886_vm9 = vcmp.eq.s32.totalorder %v1922_v45, %v2088_v41 }
 0x18a   : > { %vm1335_vm3 = vmpackc.low %vm886_vm9, %vm884_vm0 }
 0x18c   : > { %1326 = vmatpush1.bf16.msk.msra.mxu1 %vm1325_vm5, %v1522_v26  ;;  %vm1337_vm5 = vmpackc.low %vm885_vm2, %vm883_vm4 }
 0x18d   : > { %1328 = vmatprep.subr.msk.bf16.mxu1 %vm1327_vm7, %v1522_v26 }
 0x190   : > { %1330 = vmatpush1.bf16.msk.msra.mxu1 %vm1329_vm8, %v1522_v26 }
 0x191   : > { %1332 = vmatprep.subr.msk.bf16.mxu1 %vm1331_vm14, %v1522_v26 }
 0x194   : > { %1334 = vmatpush1.bf16.msk.msra.mxu1 %vm1333_vm1, %v1522_v26 }
 0x195   : > { %1336 = vmatprep.subr.msk.bf16.mxu1 %vm1335_vm3, %v1522_v26 }
 0x198   : > { %1338 = vmatpush1.bf16.msk.msra.mxu1 %vm1337_vm5, %v1522_v26 }
 0x19b   : > { %1016 = vmatmul.mubr.f32.vlgmr.msra.gmra.mrb[0].mxu1 %v292_v52 }
 0x19c   : > { %1021 = vmatprep.mubr.f32.mxu1 %v1519_v0 }
 0x19f   : > { %1022 = vmatmul.mubr.f32.gmra.mrb[2].mxu1 %v293_v17 }
 0x1a0   : > { %1027 = vmatprep.mubr.f32.mxu1 %v1519_v0 }
 0x1a3   : > { %1028 = vmatmul.mubr.f32.gmra.mrb[4].mxu1 %v294_v19 }
 0x1a4   : > { %1033 = vmatprep.mubr.f32.mxu1 %v1519_v0 }
 0x1a7   : > { %1034 = vmatmul.mubr.f32.gmra.mrb[6].mxu1 %v295_v20 }
 0x1a8   : > { %1420 = shalt.err (!%p1417_p5)
}
 0x1a9   : > { %s1421_s24 = scalar_lea.hbm %s2200_s15, 32  ;;  %s1425_s11 = scalar_lea.hbm %s2280_s4, 64 }
 0x1aa   : > { %p1422_p6 = scmp.ne.s32.totalorder %s2200_s15, %s1421_s24  ;;  %p1426_p10 = scmp.lt.u32.totalorder %s2200_s15, %s2280_s4 }
 0x1ab   : > { %p1427_p11 = scmp.lt.u32.totalorder %s1425_s11, %s1421_s24  ;;  %p1429_p13 = scmp.lt.u32.totalorder %s1421_s24, %s2200_s15 }
 0x1ac   : > { %p1423_p7 = pnand %p1422_p6, %p1597_p4 }
 0x1ad   : > { %p1428_p12 = por %p1427_p11, %p1426_p10 }
 0x1ae   : > { %p1424_p9 = pneg %p1423_p7 }
 0x1af   : > { %p1430_p0 = por %p1429_p13, %p1428_p12 }
 0x1b1   : > { %p1431_p1 = pnand %p1430_p0, %p1424_p9 }
 0x1b3   : > { %1434 = shalt.err (!%p1431_p1)
}
 0x1b4   : > { %1339 = dma.vmem_to_hbm [thread:$0]  (%p1597_p4), %s1071_s17, 32, %s2200_s15, %s1049_s25  }
 0x1b5   : > { %s1205_s14 = sshll.u32 %s2103_s16, 6  ;;  %s1298_s7 = sshll.u32 %s1509_s21, 10 }
 0x1b6   : > { %s255_s27 = scalar_lea.vmem [#allocation4], %s1205_s14  ;;  %s2228_s25 = scalar_lea.hbm %s2281_s5, %s1298_s7 }
 0x1b7   : > { %s1085_s29 = sshll.u32 %s255_s27, 4  ;;  %s1054_s8 = scalar_lea.sflag [#allocation5], %s2103_s16  ;;  %s2223_s29 = int_to_ptr.vmem [resolvable:$true] %s1085_s29 }
 0x1b8   : > { %s1435_s24 = scalar_lea.vmem %s2223_s29, 1024  ;;  %s1524_s21 = smov [#allocation4]  }
 0x1b9   : > { %p1436_p2 = scmp.ne.s32.totalorder %s2223_s29, %s1435_s24  ;;  %s1439_s9 = sshll.u32 %s1524_s21, 4  ;;  %s1440_s9 = int_to_ptr.vmem [resolvable:$false] %s1439_s9 }
 0x1ba   : > { %s1441_s10 = scalar_lea.vmem %s1440_s9, 2048  ;;  %p1442_p6 = scmp.lt.s32.totalorder %s2223_s29, %s1440_s9 }
 0x1bb   : > { %p1437_p3 = pnand %p1436_p2, %p1597_p4  ;;  %p1443_p7 = scmp.lt.s32.totalorder %s1441_s10, %s1435_s24 }
 0x1bd   : > { %p1438_p5 = pneg %p1437_p3  ;;  %p1444_p9 = por %p1443_p7, %p1442_p6 }
 0x1bf   : > { %p1445_p10 = pnand %p1444_p9, %p1438_p5 }
 0x26e   : > { %v1017_v0 = vpop.f32.mrb[0].mxu1 }
 0x26f   : > { %1040 = vst [vmem:[%s255_s27] sm:$0xff] %v1017_v0  ;;  %v1019_v22 = vpop.f32.mrb[1].mxu1 }
 0x270   : > { %1041 = vst [vmem:[%s255_s27 + $0x8] sm:$0xff] %v1019_v22 }
 0x272   : > { %v1023_v27 = vpop.f32.mrb[2].mxu1 }
 0x273   : > { %1042 = vst [vmem:[%s255_s27 + $0x10] sm:$0xff] %v1023_v27  ;;  %v1025_v28 = vpop.f32.mrb[3].mxu1 }
 0x274   : > { %1043 = vst [vmem:[%s255_s27 + $0x18] sm:$0xff] %v1025_v28 }
 0x276   : > { %v1029_v29 = vpop.f32.mrb[4].mxu1 }
 0x277   : > { %1044 = vst [vmem:[%s255_s27 + $0x20] sm:$0xff] %v1029_v29  ;;  %v1031_v33 = vpop.f32.mrb[5].mxu1 }
 0x278   : > { %1045 = vst [vmem:[%s255_s27 + $0x28] sm:$0xff] %v1031_v33 }
 0x27a   : > { %v1035_v35 = vpop.f32.mrb[6].mxu1 }
 0x27b   : > { %1046 = vst [vmem:[%s255_s27 + $0x30] sm:$0xff] %v1035_v35  ;;  %v1037_v36 = vpop.f32.mrb[7].mxu1 }
 0x27c   : > { %1047 = vst [vmem:[%s255_s27 + $0x38] sm:$0xff] %v1037_v36 }
 0x27d   : > { %1448 = shalt.err (!%p1445_p10)
}
 0x27e   : > { %s1449_s11 = scalar_lea.hbm %s2228_s25, 1024  ;;  %s1453_s14 = scalar_lea.hbm %s2281_s5, 2048 }
 0x27f   : > { %p1450_p11 = scmp.ne.s32.totalorder %s2228_s25, %s1449_s11  ;;  %p1454_p0 = scmp.lt.u32.totalorder %s2228_s25, %s2281_s5 }
 0x280   : > { %p1455_p1 = scmp.lt.u32.totalorder %s1453_s14, %s1449_s11  ;;  %p1457_p3 = scmp.lt.u32.totalorder %s1449_s11, %s2228_s25 }
 0x281   : > { %p1451_p12 = pnand %p1450_p11, %p1597_p4 }
 0x282   : > { %p1456_p2 = por %p1455_p1, %p1454_p0 }
 0x283   : > { %p1452_p13 = pneg %p1451_p12 }
 0x284   : > { %p1458_p5 = por %p1457_p3, %p1456_p2 }
 0x286   : > { %p1459_p6 = pnand %p1458_p5, %p1452_p13 }
 0x288   : > { %1462 = shalt.err (!%p1459_p6)
}
 0x289   : > { %s1525_s15 = smov 256   ;;  %s1526_s17 = smov 16  }
 0x28a   : > { %1340 = dma.vmem_to_hbm [thread:$0]  (%p1597_p4), %s2223_s29, 1024, %s2228_s25, %s1054_s8, %s1525_s15, %s1525_s15, %s1526_s17  }
 0x28b PF: > { %p1350_p7 = scmp.ge.s32.totalorder %s1517_s23, 2  ;;  %s1100_s24 = sand.u32 1, %s1497_s18  }
 0x28c   : > { %s1101_s21 = scalar_lea.sflag [#allocation3], %s1100_s24 }
 0x28d   : > { %p1344_p9 = pnand %p1350_p7, %p1604_p8 }
 0x28f   : > { %1488 = dma.done.wait (!%p1344_p9), %s1101_s21, 32  }
 0x290   : > { %1490 = vsyncadd (!%p1344_p9), %s1101_s21, 4294967264  ;;  %s1110_s9 = scalar_lea.sflag [#allocation5], %s1100_s24 }
 0x291   : > { %1492 = dma.done.wait (!%p1344_p9), %s1110_s9, 1024  }
 0x292   : > { %1494 = vsyncadd (!%p1344_p9), %s1110_s9, 4294966272  ;;  %s22_s23 = sadd.s32 1, %s1517_s23   ;;  %s2292_s18 = smov %s1501_s19 }
 0x293   : > { %p19_p10 = scmp.ge.s32.totalorder %s22_s23, 4   ;;  %s2293_s19 = smov %s1505_s20 }
 0x294   : > { %s2294_s20 = smov %s1610_s6  ;;  %s2295_s21 = smov %s1513_s22 }
 0x295   : > { %s2296_s22 = smov %s2298_s26  ;;  %21 = sbr.rel (!%p19_p10) target bundleno = 6 (0x6), region = 88 }
 0x29c   :  { %1115 = vsyncpa [#allocation3], 1 }
 0x29d   :  { %1117 = vsyncpa [#allocation3 + $0x1], 1 }
 0x29e   :  { %1118 = vsyncpa [#allocation5], 1 }
 0x29f   :  { %1120 = vsyncpa [#allocation5 + $0x1], 1 }

// kernel: tpu_custom_call.1
= control target key start
LH: loop header
LB: loop body
LE: loop exit
PB: predicated region body
PF: predicated region fallthrough
CT: control target
= control target key end

     0   :  { %11 = vsyncpa [#allocation3], 0  ;;  %s2276_s0 = inlined_call_operand.vmem [shape: f32[2,32,256], index: 0, kind: input, shape index: {}]   ;;  %s2277_s1 = inlined_call_operand.vmem [shape: f32[128,32], index: 1, kind: input, shape index: {}]   ;;  %s2278_s2 = inlined_call_operand.vmem [shape: f32[32,128], index: 2, kind: input, shape index: {}]   ;;  %s2279_s3 = inlined_call_operand.vmem [shape: f32[128,1], index: 3, kind: input, shape index: {}]   ;;  %s2280_s4 = inlined_call_operand.hbm [shape: s32[2,1,256], index: 4, kind: output, shape index: {0}]   ;;  %s2281_s5 = inlined_call_operand.hbm [shape: f32[2,32,256], index: 5, kind: output, shape index: {1}]  }
   0x1   :  { %13 = vsyncpa [#allocation3 + $0x1], 0 }
   0x2   :  { %14 = vsyncpa [#allocation5], 0 }
   0x3   :  { %16 = vsyncpa [#allocation5 + $0x1], 0  ;;  %s1557_s18 = smov 0   ;;  %s1559_s19 = smov 0  }
   0x4   :  { %s1561_s20 = smov 0   ;;  %s1563_s21 = smov 0  }
   0x5   :  { %s1565_s22 = smov 0   ;;  %s1567_s23 = smov 0  }
   0x6 LB: > { %s1199_s24 = sadd.s32 4294967295, %s1517_s23   ;;  %s1200_s25 = sadd.s32 4294967294, %s1517_s23   ;;  %s1517_s23 = sphi %s1567_s23, %s22_s23   ;;  %s1513_s22 = sphi %s1565_s22, %s2296_s22   ;;  %s1509_s21 = sphi %s1563_s21, %s2295_s21   ;;  %s1505_s20 = sphi %s1561_s20, %s2294_s20   ;;  %s1501_s19 = sphi %s1559_s19, %s2293_s19   ;;  %s1497_s18 = sphi %s1557_s18, %s2292_s18  }
   0x7   : > { %s34_s26 = sadd.s32 1, %s1513_s22  ;;  %s134_s27 = sadd.s32 1, %s1505_s20 }
   0x8   : > { %p36_p0 = scmp.ge.s32.totalorder %s34_s26, 2  ;;  %p144_p1 = scmp.ne.s32.totalorder %s1505_s20, %s1501_s19 }
   0x9   : > { %p145_p2 = scmp.eq.s32.totalorder %s1199_s24, 1  ;;  %p150_p3 = scmp.ne.s32.totalorder %s1501_s19, %s1497_s18 }
   0xa   : > { %s2298_s26 = smov (%p36_p0, %s34_s26), 0  ;;  %p151_p5 = scmp.eq.s32.totalorder %s1200_s25, 1 }
   0xb   : > { %p1597_p4 = por %p145_p2, %p144_p1  ;;  %s129_s29 = ssub.s32 %s1513_s22, %s2298_s26 }
   0xc   : > { %p1203_p6 = scmp.ge.s32.totalorder %s1517_s23, 1  ;;  %p132_p7 = scmp.eq.s32.totalorder %s129_s29, 0 }
   0xd   : > { %p1604_p8 = por %p151_p5, %p150_p3  ;;  %p219_p9 = scmp.lt.s32.totalorder %s1517_s23, 3 }
   0xe   : > { %s1610_s6 = scalar_select %p132_p7, %s1505_s20, %s134_s27  }
   0xf   : > { %p220_p10 = pnand %p1203_p6, %p219_p9 }
  0x10   : > { %p257_p11 = scmp.lt.s32.totalorder (!%p220_p10), %s1509_s21, 1  ;;  %v1519_v0 = vmov (!%p220_p10), 0.0   ;;  %v1520_v1 = vmov (!%p220_p10), 0   ;;  %v296_v2 = vld [vmem:[%s2279_s3] sm:$0xff] (!%p220_p10)  ;;  %v297_v3 = vld [vmem:[%s2279_s3 + $0x8] sm:$0xff] (!%p220_p10)  ;;  %v298_v15 = vld [vmem:[%s2279_s3 + $0x10] sm:$0xff] (!%p220_p10) }
  0x11   : > { %223 = sbr.rel (%p220_p10) target bundleno = 651 (0x28b), region = 36  ;;  %425 = vmatprep.mubr.f32.mxu0 (!%p220_p10), %v1519_v0  ;;  %1015 = vmatprep.mubr.f32.mxu1 (!%p220_p10), %v1519_v0  ;;  %v299_v17 = vld [vmem:[%s2279_s3 + $0x18] sm:$0xff] (!%p220_p10)  ;;  %v300_v18 = vld [vmem:[%s2279_s3 + $0x20] sm:$0xff] (!%p220_p10)  ;;  %vm312_vm0 = vcmask (!%p220_p10), 261120   ;;  %v301_v20 = vld [vmem:[%s2279_s3 + $0x28] sm:$0xff] (!%p220_p10)  ;;  %s2103_s16 = sand.u32 (!%p220_p10), 1, %s1501_s19  }
  0x12   : > { %1405 = vset.pattern.permute.xlu0 (!%p220_p10), %v1520_v1  ;;  %1406 = vset.pattern.permute.xlu1 (!%p220_p10), %v1520_v1  ;;  %v276_v19 = vld [vmem:[%s2277_s1] sm:$0xff] (!%p220_p10)  ;;  %v302_v21 = vld [vmem:[%s2279_s3 + $0x30] sm:$0xff] (!%p220_p10)  ;;  %v277_v22 = vld [vmem:[%s2277_s1 + $0x8] sm:$0xff] (!%p220_p10)  ;;  %s1204_s17 = sshll.u32 (!%p220_p10), %s2103_s16, 1  ;;  %s1297_s12 = sshll.u32 (!%p220_p10), %s1509_s21, 5 }
  0x13   : > { %524 = vperm.xlu0 (!%p220_p10), %1405, %v296_v2   ;;  %534 = vperm.xlu1 (!%p220_p10), %1406, %v298_v15   ;;  %v303_v23 = vld [vmem:[%s2279_s3 + $0x38] sm:$0xff] (!%p220_p10)  ;;  %v304_v24 = vld [vmem:[%s2279_s3 + $0x40] sm:$0xff] (!%p220_p10)  ;;  %v278_v25 = vld [vmem:[%s2277_s1 + $0x10] sm:$0xff] (!%p220_p10)  ;;  %s2131_s24 = scalar_lea.vmem (!%p220_p10), [#allocation2], %s1204_s17  ;;  %s2200_s15 = scalar_lea.hbm (!%p220_p10), %s2280_s4, %s1297_s12 }
  0x14   : > { %v305_v26 = vld [vmem:[%s2279_s3 + $0x48] sm:$0xff] (!%p220_p10)  ;;  %v306_v27 = vld [vmem:[%s2279_s3 + $0x50] sm:$0xff] (!%p220_p10)  ;;  %v279_v28 = vld [vmem:[%s2277_s1 + $0x18] sm:$0xff] (!%p220_p10)  ;;  %s1070_s17 = sshll.u32 (!%p220_p10), %s2131_s24, 4  ;;  %s1049_s25 = scalar_lea.sflag (!%p220_p10), [#allocation3], %s2103_s16  ;;  %s1071_s17 = int_to_ptr.vmem [resolvable:$true] %s1070_s17 }
  0x15   : > { %v307_v29 = vld [vmem:[%s2279_s3 + $0x58] sm:$0xff] (!%p220_p10)  ;;  %v308_v30 = vld [vmem:[%s2279_s3 + $0x60] sm:$0xff] (!%p220_p10)  ;;  %v309_v32 = vld [vmem:[%s2279_s3 + $0x68] sm:$0xff] (!%p220_p10)  ;;  %s1407_s27 = scalar_lea.vmem (!%p220_p10), %s1071_s17, 32  ;;  %s1523_s29 = smov (!%p220_p10), [#allocation2]  }
  0x16   : > { %v280_v31 = vld [vmem:[%s2277_s1 + $0x20] sm:$0xff] (!%p220_p10)  ;;  %v310_v33 = vld [vmem:[%s2279_s3 + $0x70] sm:$0xff] (!%p220_p10)  ;;  %v281_v34 = vld [vmem:[%s2277_s1 + $0x28] sm:$0xff] (!%p220_p10)  ;;  %p1408_p12 = scmp.ne.s32.totalorder (!%p220_p10), %s1071_s17, %s1407_s27 }
  0x17   : > { %529 = vperm.xlu0 (!%p220_p10), %1405, %v297_v3   ;;  %539 = vperm.xlu1 (!%p220_p10), %1406, %v299_v17   ;;  %v311_v35 = vld [vmem:[%s2279_s3 + $0x78] sm:$0xff] (!%p220_p10)  ;;  %v282_v36 = vld [vmem:[%s2277_s1 + $0x30] sm:$0xff] (!%p220_p10)  ;;  %v284_v38 = vld [vmem:[%s2277_s1 + $0x40] sm:$0xff] (!%p220_p10) }
  0x18   : > { %s258_s7 = scalar_select %p257_p11, %s1509_s21, 1  ;;  %v283_v37 = vld [vmem:[%s2277_s1 + $0x38] sm:$0xff]  ;;  %v285_v39 = vld [vmem:[%s2277_s1 + $0x48] sm:$0xff]  ;;  %v286_v40 = vld [vmem:[%s2277_s1 + $0x50] sm:$0xff] }
  0x19   : > { %v287_v41 = vld [vmem:[%s2277_s1 + $0x58] sm:$0xff]  ;;  %v288_v42 = vld [vmem:[%s2277_s1 + $0x60] sm:$0xff]  ;;  %v289_v43 = vld [vmem:[%s2277_s1 + $0x68] sm:$0xff]  ;;  %p1409_p13 = pnand %p1408_p12, %p1597_p4 }
  0x1a   : > { %s1296_s8 = sshll.u32 %s258_s7, 6  ;;  %v290_v44 = vld [vmem:[%s2277_s1 + $0x70] sm:$0xff]  ;;  %v291_v45 = vld [vmem:[%s2277_s1 + $0x78] sm:$0xff]  ;;  %s1411_s7 = sshll.u32 %s1523_s29, 4  ;;  %s1412_s7 = int_to_ptr.vmem [resolvable:$false] %s1411_s7 }
  0x1b   : > { %s264_s11 = scalar_lea.vmem %s2276_s0, %s1296_s8  ;;  %544 = vperm.xlu0 %1405, %v300_v18   ;;  %549 = vperm.xlu1 %1406, %v301_v20   ;;  %p1410_p0 = pneg %p1409_p13 }
  0x1c   : > { %v269_v4 = vld [vmem:[%s264_s11 + $0x8] sm:$0xff]  ;;  %v271_v5 = vld [vmem:[%s264_s11 + $0x18] sm:$0xff]  ;;  %v268_v6 = vld [vmem:[%s264_s11] sm:$0xff]  ;;  %s1413_s8 = scalar_lea.vmem %s1412_s7, 64  ;;  %p1414_p1 = scmp.lt.s32.totalorder %s1071_s17, %s1412_s7 }
  0x1d   : > { %v1299_v7 = vpack.c.bf16 %v271_v5, %v269_v4  ;;  %v270_v8 = vld [vmem:[%s264_s11 + $0x10] sm:$0xff]  ;;  %v273_v9 = vld [vmem:[%s264_s11 + $0x28] sm:$0xff]  ;;  %v275_v10 = vld [vmem:[%s264_s11 + $0x38] sm:$0xff]  ;;  %p1415_p2 = scmp.lt.s32.totalorder %s1413_s8, %s1407_s27 }
  0x1e   : > { %v1301_v11 = vpack.c.bf16 %v270_v8, %v268_v6  ;;  %v1303_v12 = vpack.c.bf16 %v275_v10, %v273_v9  ;;  %v272_v13 = vld [vmem:[%s264_s11 + $0x20] sm:$0xff]  ;;  %v274_v14 = vld [vmem:[%s264_s11 + $0x30] sm:$0xff] }
  0x1f   : > { %1300 = vmatprep.subr.bf16.mxu0 %v1299_v7  ;;  %v1305_v16 = vpack.c.bf16 %v274_v14, %v272_v13  ;;  %554 = vperm.xlu0 %1405, %v302_v21   ;;  %p1416_p3 = por %p1415_p2, %p1414_p1 }
  0x20   : > { %1302 = vmatpush1.bf16.msra.mxu0 %v1301_v11  ;;  %559 = vperm.xlu1 %1406, %v303_v23  }
  0x21   : > { %1304 = vmatprep.subr.bf16.mxu0 %v1303_v12  ;;  %p1417_p5 = pnand %p1416_p3, %p1410_p0 }
  0x23   : > { %564 = vperm.xlu0 %1405, %v304_v24  }
  0x24   : > { %1306 = vmatpush1.bf16.msra.mxu0 %v1305_v16  ;;  %569 = vperm.xlu1 %1406, %v305_v26  }
  0x27   : > { %1208 = vmatmul.mubr.msk.f32.vlgmr.msra.gmra.mrb[0].mxu0 %vm312_vm0, %v276_v19  ;;  %574 = vperm.xlu0 %1405, %v306_v27  }
  0x28   : > { %431 = vmatprep.mubr.f32.mxu0 %v1519_v0  ;;  %579 = vperm.xlu1 %1406, %v307_v29  }
  0x2b   : > { %1209 = vmatmul.mubr.msk.f32.gmra.mrb[2].mxu0 %vm312_vm0, %v277_v22  ;;  %584 = vperm.xlu0 %1405, %v308_v30  }
  0x2c   : > { %437 = vmatprep.mubr.f32.mxu0 %v1519_v0  ;;  %589 = vperm.xlu1 %1406, %v309_v32  }
  0x2f   : > { %1210 = vmatmul.mubr.msk.f32.gmra.mrb[4].mxu0 %vm312_vm0, %v278_v25  ;;  %594 = vperm.xlu0 %1405, %v310_v33  }
  0x30   : > { %443 = vmatprep.mubr.f32.mxu0 %v1519_v0  ;;  %599 = vperm.xlu1 %1406, %v311_v35  }
  0x33   : > { %1211 = vmatmul.mubr.msk.f32.gmra.mrb[6].mxu0 %vm312_vm0, %v279_v28 }
  0x34   : > { %449 = vmatprep.mubr.f32.mxu0 %v1519_v0 }
  0x37   : > { %1212 = vmatmul.mubr.msk.f32.gmra.mrb[8].mxu0 %vm312_vm0, %v280_v31 }
  0x38   : > { %455 = vmatprep.mubr.f32.mxu0 %v1519_v0 }
  0x3b   : > { %1213 = vmatmul.mubr.msk.f32.gmra.mrb[10].mxu0 %vm312_vm0, %v281_v34 }
  0x3c   : > { %461 = vmatprep.mubr.f32.mxu0 %v1519_v0 }
  0x3f   : > { %1214 = vmatmul.mubr.msk.f32.gmra.mrb[12].mxu0 %vm312_vm0, %v282_v36 }
  0x40   : > { %467 = vmatprep.mubr.f32.mxu0 %v1519_v0 }
  0x43   : > { %1215 = vmatmul.mubr.msk.f32.gmra.mrb[14].mxu0 %vm312_vm0, %v283_v37 }
  0x44   : > { %473 = vmatprep.mubr.f32.mxu0 %v1519_v0 }
  0x47   : > { %1216 = vmatmul.mubr.msk.f32.gmra.mrb[16].mxu0 %vm312_vm0, %v284_v38 }
  0x48   : > { %479 = vmatprep.mubr.f32.mxu0 %v1519_v0 }
  0x4b   : > { %1217 = vmatmul.mubr.msk.f32.gmra.mrb[18].mxu0 %vm312_vm0, %v285_v39 }
  0x4c   : > { %485 = vmatprep.mubr.f32.mxu0 %v1519_v0 }
  0x4f   : > { %1218 = vmatmul.mubr.msk.f32.gmra.mrb[20].mxu0 %vm312_vm0, %v286_v40 }
  0x50   : > { %491 = vmatprep.mubr.f32.mxu0 %v1519_v0 }
  0x53   : > { %1219 = vmatmul.mubr.msk.f32.gmra.mrb[22].mxu0 %vm312_vm0, %v287_v41 }
  0x54   : > { %497 = vmatprep.mubr.f32.mxu0 %v1519_v0 }
  0x57   : > { %1220 = vmatmul.mubr.msk.f32.gmra.mrb[24].mxu0 %vm312_vm0, %v288_v42 }
  0x58   : > { %503 = vmatprep.mubr.f32.mxu0 %v1519_v0 }
  0x5b   : > { %1221 = vmatmul.mubr.msk.f32.gmra.mrb[26].mxu0 %vm312_vm0, %v289_v43 }
  0x5c   : > { %509 = vmatprep.mubr.f32.mxu0 %v1519_v0 }
  0x5f   : > { %1222 = vmatmul.mubr.msk.f32.gmra.mrb[28].mxu0 %vm312_vm0, %v290_v44 }
  0x60   : > { %515 = vmatprep.mubr.f32.mxu0 %v1519_v0 }
  0x63   : > { %1223 = vmatmul.mubr.msk.f32.gmra.mrb[30].mxu0 %vm312_vm0, %v291_v45 }
  0x92   : > { %v525_v48 = vpop.permute.xlu0 %524  ;;  %v535_v51 = vpop.permute.xlu1 %534 }
  0x96   : > { %v530_v57 = vpop.permute.xlu0 %529  ;;  %v540_v60 = vpop.permute.xlu1 %539 }
  0x9a   : > { %v545_v6 = vpop.permute.xlu0 %544  ;;  %v550_v13 = vpop.permute.xlu1 %549 }
  0x9e   : > { %v555_v20 = vpop.permute.xlu0 %554 }
  0x9f   : > { %v560_v27 = vpop.permute.xlu1 %559 }
  0xa2   : > { %v565_v34 = vpop.permute.xlu0 %564 }
  0xa3   : > { %v570_v41 = vpop.permute.xlu1 %569 }
  0xfa   : > { %v427_v46 = vpop.f32.mrb[0].mxu0 }
  0xfb   : > { %v429_v47 = vpop.f32.mrb[1].mxu0  ;;  %v1746_v53 = vsub.f32 %v427_v46, %v525_v48 }
  0xfc   : > { %v1750_v56 = vsub.f32 %v429_v47, %v525_v48  ;;  %v575_v48 = vpop.permute.xlu0 %574 }
  0xfe   : > { %v433_v49 = vpop.f32.mrb[2].mxu0 }
  0xff   : > { %v435_v50 = vpop.f32.mrb[3].mxu0  ;;  %v1758_v63 = vsub.f32 %v433_v49, %v530_v57 }
 0x100   : > { %v1762_v3 = vsub.f32 %v435_v50, %v530_v57 }
 0x102   : > { %v439_v52 = vpop.f32.mrb[4].mxu0 }
 0x103   : > { %v1748_v54 = vsub.f32 %v439_v52, %v535_v51  ;;  %v441_v55 = vpop.f32.mrb[5].mxu0 }
 0x104   : > { %v1752_v58 = vsub.f32 %v441_v55, %v535_v51 }
 0x105   : > { %v634_v59 = vmax.f32 %v1746_v53, %v1748_v54 }
 0x106   : > { %v655_v61 = vmax.f32 %v1750_v56, %v1752_v58  ;;  %v445_v62 = vpop.f32.mrb[6].mxu0 }
 0x107   : > { %v1760_v1 = vsub.f32 %v445_v62, %v540_v60  ;;  %v447_v2 = vpop.f32.mrb[7].mxu0 }
 0x108   : > { %v1764_v4 = vsub.f32 %v447_v2, %v540_v60 }
 0x109   : > { %v635_v5 = vmax.f32 %v1758_v63, %v1760_v1 }
 0x10a   : > { %v656_v7 = vmax.f32 %v1762_v3, %v1764_v4  ;;  %v451_v8 = vpop.f32.mrb[8].mxu0 }
 0x10b   : > { %v1770_v9 = vsub.f32 %v451_v8, %v545_v6  ;;  %v453_v10 = vpop.f32.mrb[9].mxu0 }
 0x10c   : > { %v1772_v11 = vsub.f32 %v453_v10, %v545_v6 }
 0x10d   : > { %v636_v12 = vmax.f32 %v634_v59, %v1770_v9  ;;  %v580_v59 = vpop.permute.xlu1 %579 }
 0x10e   : > { %v657_v14 = vmax.f32 %v655_v61, %v1772_v11  ;;  %v457_v15 = vpop.f32.mrb[10].mxu0 }
 0x10f   : > { %v1776_v16 = vsub.f32 %v457_v15, %v550_v13  ;;  %v459_v17 = vpop.f32.mrb[11].mxu0 }
 0x110   : > { %v1778_v18 = vsub.f32 %v459_v17, %v550_v13 }
 0x111   : > { %v637_v19 = vmax.f32 %v635_v5, %v1776_v16  ;;  %v590_v17 = vpop.permute.xlu1 %589 }
 0x112   : > { %v658_v21 = vmax.f32 %v656_v7, %v1778_v18  ;;  %v463_v22 = vpop.f32.mrb[12].mxu0  ;;  %v585_v7 = vpop.permute.xlu0 %584 }
 0x113   : > { %v1782_v23 = vsub.f32 %v463_v22, %v555_v20  ;;  %v465_v24 = vpop.f32.mrb[13].mxu0 }
 0x114   : > { %v1784_v25 = vsub.f32 %v465_v24, %v555_v20 }
 0x115   : > { %v638_v26 = vmax.f32 %v636_v12, %v1782_v23 }
 0x116   : > { %v659_v28 = vmax.f32 %v657_v14, %v1784_v25  ;;  %v469_v29 = vpop.f32.mrb[14].mxu0 }
 0x117   : > { %v1788_v30 = vsub.f32 %v469_v29, %v560_v27  ;;  %v471_v31 = vpop.f32.mrb[15].mxu0 }
 0x118   : > { %v1790_v32 = vsub.f32 %v471_v31, %v560_v27  ;;  %v595_v27 = vpop.permute.xlu0 %594 }
 0x119   : > { %v639_v33 = vmax.f32 %v637_v19, %v1788_v30 }
 0x11a   : > { %v660_v35 = vmax.f32 %v658_v21, %v1790_v32  ;;  %v475_v36 = vpop.f32.mrb[16].mxu0 }
 0x11b   : > { %v1794_v37 = vsub.f32 %v475_v36, %v565_v34  ;;  %v477_v38 = vpop.f32.mrb[17].mxu0  ;;  %v600_v36 = vpop.permute.xlu1 %599 }
 0x11c   : > { %v1796_v39 = vsub.f32 %v477_v38, %v565_v34 }
 0x11d   : > { %v640_v40 = vmax.f32 %v638_v26, %v1794_v37 }
 0x11e   : > { %v661_v42 = vmax.f32 %v659_v28, %v1796_v39  ;;  %v481_v43 = vpop.f32.mrb[18].mxu0 }
 0x11f   : > { %v1800_v44 = vsub.f32 %v481_v43, %v570_v41  ;;  %v483_v45 = vpop.f32.mrb[19].mxu0 }
 0x120   : > { %v1802_v46 = vsub.f32 %v483_v45, %v570_v41 }
 0x121   : > { %v641_v47 = vmax.f32 %v639_v33, %v1800_v44 }
 0x122   : > { %v662_v49 = vmax.f32 %v660_v35, %v1802_v46  ;;  %v487_v50 = vpop.f32.mrb[20].mxu0 }
 0x123   : > { %v1806_v51 = vsub.f32 %v487_v50, %v575_v48  ;;  %v489_v52 = vpop.f32.mrb[21].mxu0 }
 0x124   : > { %v1808_v55 = vsub.f32 %v489_v52, %v575_v48  ;;  %v676_v52 = vlaneseq }
 0x125   : > { %v642_v57 = vmax.f32 %v640_v40, %v1806_v51 }
 0x126   : > { %v663_v60 = vmax.f32 %v661_v42, %v1808_v55  ;;  %v493_v61 = vpop.f32.mrb[22].mxu0 }
 0x127   : > { %v1812_v62 = vsub.f32 %v493_v61, %v580_v59  ;;  %v495_v2 = vpop.f32.mrb[23].mxu0 }
 0x128   : > { %v1814_v5 = vsub.f32 %v495_v2, %v580_v59  ;;  %v1843_v2 = vshrl.u32 %v676_v52, 7 }
 0x129   : > { %v643_v6 = vmax.f32 %v641_v47, %v1812_v62 }
 0x12a   : > { %v664_v8 = vmax.f32 %v662_v49, %v1814_v5  ;;  %v499_v10 = vpop.f32.mrb[24].mxu0 }
 0x12b   : > { %v1818_v12 = vsub.f32 %v499_v10, %v585_v7  ;;  %v501_v13 = vpop.f32.mrb[25].mxu0 }
 0x12c   : > { %v1820_v14 = vsub.f32 %v501_v13, %v585_v7  ;;  %v1846_v13 = vadd.s32 8, %v1843_v2 }
 0x12d   : > { %v644_v15 = vmax.f32 %v642_v57, %v1818_v12 }
 0x12e   : > { %v665_v19 = vmax.f32 %v663_v60, %v1820_v14  ;;  %v505_v20 = vpop.f32.mrb[26].mxu0 }
 0x12f   : > { %v1824_v21 = vsub.f32 %v505_v20, %v590_v17  ;;  %v507_v22 = vpop.f32.mrb[27].mxu0  ;;  %v1858_v20 = vadd.s32 40, %v1843_v2 }
 0x130   : > { %v1826_v24 = vsub.f32 %v507_v22, %v590_v17  ;;  %v1852_v17 = vadd.s32 24, %v1843_v2  ;;  %v1861_v22 = vadd.s32 48, %v1843_v2 }
 0x131   : > { %v645_v26 = vmax.f32 %v643_v6, %v1824_v21 }
 0x132   : > { %v666_v28 = vmax.f32 %v664_v8, %v1826_v24  ;;  %v511_v29 = vpop.f32.mrb[28].mxu0 }
 0x133   : > { %v1830_v31 = vsub.f32 %v511_v29, %v595_v27  ;;  %v513_v33 = vpop.f32.mrb[29].mxu0  ;;  %v1872_v29 = vadd.s32 72, %v1843_v2 }
 0x134   : > { %v1832_v34 = vsub.f32 %v513_v33, %v595_v27  ;;  %v1866_v27 = vadd.s32 56, %v1843_v2  ;;  %v1875_v33 = vadd.s32 80, %v1843_v2 }
 0x135   : > { %v646_v35 = vmax.f32 %v644_v15, %v1830_v31  ;;  %v1849_v15 = vadd.s32 16, %v1843_v2 }
 0x136   : > { %v667_v38 = vmax.f32 %v665_v19, %v1832_v34  ;;  %v517_v40 = vpop.f32.mrb[30].mxu0  ;;  %v1855_v19 = vadd.s32 32, %v1843_v2 }
 0x137   : > { %v1836_v41 = vsub.f32 %v517_v40, %v600_v36  ;;  %v519_v42 = vpop.f32.mrb[31].mxu0  ;;  %v1916_v40 = vadd.s32 104, %v1843_v2 }
 0x138   : > { %v1838_v43 = vsub.f32 %v519_v42, %v600_v36  ;;  %v1881_v36 = vadd.s32 96, %v1843_v2  ;;  %v1919_v42 = vadd.s32 112, %v1843_v2 }
 0x139   : > { %v647_v45 = vmax.f32 %v645_v26, %v1836_v41 }
 0x13a   : > { %v668_v47 = vmax.f32 %v666_v28, %v1838_v43  ;;  %v1869_v28 = vadd.s32 64, %v1843_v2 }
 0x13b   : > { %v648_v48 = vmax.f32 %v646_v35, %v647_v45  ;;  %v1878_v35 = vadd.s32 88, %v1843_v2  ;;  %v1922_v45 = vadd.s32 120, %v1843_v2 }
 0x13c   : > { %v669_v49 = vmax.f32 %v667_v38, %v668_v47 }
 0x13d   : > { %v649_v50 = vrot.slane %v648_v48, 4 }
 0x13e   : > { %v670_v57 = vrot.slane %v669_v49, 4 }
 0x13f   : > { %v650_v59 = vmax.f32 %v648_v48, %v649_v50 }
 0x140   : > { %v671_v60 = vmax.f32 %v669_v49, %v670_v57 }
 0x141   : > { %v651_v61 = vrot.slane %v650_v59, 2 }
 0x142   : > { %v672_v6 = vrot.slane %v671_v60, 2 }
 0x143   : > { %v652_v7 = vmax.f32 %v650_v59, %v651_v61 }
 0x144   : > { %v673_v8 = vmax.f32 %v671_v60, %v672_v6 }
 0x145   : > { %v653_v10 = vrot.slane %v652_v7, 1 }
 0x146   : > { %v674_v38 = vrot.slane %v673_v8, 1 }
 0x147   : > { %v1863_v26 = vmax.f32 %v652_v7, %v653_v10 }
 0x148   : > { %v1924_v47 = vmax.f32 %v673_v8, %v674_v38 }
 0x149   : > { %vm693_vm1 = vcmp.eq.f32.partialorder %v1746_v53, %v1863_v26  ;;  %vm695_vm2 = vcmp.eq.f32.partialorder %v1758_v63, %v1863_v26  ;;  %vm697_vm3 = vcmp.eq.f32.partialorder %v1748_v54, %v1863_v26  ;;  %vm699_vm4 = vcmp.eq.f32.partialorder %v1760_v1, %v1863_v26 }
 0x14a   : > { %vm701_vm5 = vcmp.eq.f32.partialorder %v1770_v9, %v1863_v26  ;;  %vm703_vm6 = vcmp.eq.f32.partialorder %v1776_v16, %v1863_v26  ;;  %vm705_vm7 = vcmp.eq.f32.partialorder %v1782_v23, %v1863_v26  ;;  %vm707_vm8 = vcmp.eq.f32.partialorder %v1788_v30, %v1863_v26 }
 0x14b   : > { %vm709_vm9 = vcmp.eq.f32.partialorder %v1794_v37, %v1863_v26  ;;  %vm711_vm10 = vcmp.eq.f32.partialorder %v1800_v44, %v1863_v26  ;;  %vm713_vm11 = vcmp.eq.f32.partialorder %v1806_v51, %v1863_v26  ;;  %vm715_vm12 = vcmp.eq.f32.partialorder %v1812_v62, %v1863_v26 }
 0x14c   : > { %vm717_vm13 = vcmp.eq.f32.partialorder %v1818_v12, %v1863_v26  ;;  %vm719_vm14 = vcmp.eq.f32.partialorder %v1824_v21, %v1863_v26  ;;  %vm721_vm15 = vcmp.eq.f32.partialorder %v1830_v31, %v1863_v26  ;;  %vm723_vm0 = vcmp.eq.f32.partialorder %v1836_v41, %v1863_v26 }
 0x14d   : > { %v725_v48 = vsel %vm693_vm1, %v1843_v2, 128  ;;  %v727_v49 = vsel %vm695_vm2, %v1846_v13, 128  ;;  %v729_v50 = vsel %vm697_vm3, %v1849_v15, 128  ;;  %v731_v57 = vsel %vm699_vm4, %v1852_v17, 128 }
 0x14e   : > { %v733_v53 = vsel %vm701_vm5, %v1855_v19, 128  ;;  %v735_v63 = vsel %vm703_vm6, %v1858_v20, 128  ;;  %v737_v54 = vsel %vm705_vm7, %v1861_v22, 128  ;;  %v739_v1 = vsel %vm707_vm8, %v1866_v27, 128 }
 0x14f   : > { %v741_v9 = vsel %vm709_vm9, %v1869_v28, 128  ;;  %v743_v16 = vsel %vm711_vm10, %v1872_v29, 128  ;;  %v745_v23 = vsel %vm713_vm11, %v1875_v33, 128  ;;  %v747_v30 = vsel %vm715_vm12, %v1878_v35, 128 }
 0x150   : > { %vm757_vm1 = vcmp.lt.s32.totalorder %v725_v48, %v729_v50  ;;  %vm759_vm2 = vcmp.lt.s32.totalorder %v727_v49, %v731_v57  ;;  %vm694_vm3 = vcmp.eq.f32.partialorder %v1750_v56, %v1924_v47  ;;  %vm696_vm4 = vcmp.eq.f32.partialorder %v1762_v3, %v1924_v47 }
 0x151   : > { %v758_v37 = vsel %vm757_vm1, %v725_v48, %v729_v50  ;;  %v760_v44 = vsel %vm759_vm2, %v727_v49, %v731_v57  ;;  %vm710_vm6 = vcmp.eq.f32.partialorder %v1796_v39, %v1924_v47  ;;  %vm718_vm12 = vcmp.eq.f32.partialorder %v1820_v14, %v1924_v47 }
 0x152   : > { %vm761_vm7 = vcmp.lt.s32.totalorder %v758_v37, %v733_v53  ;;  %vm763_vm8 = vcmp.lt.s32.totalorder %v760_v44, %v735_v63  ;;  %vm720_vm9 = vcmp.eq.f32.partialorder %v1826_v24, %v1924_v47  ;;  %v749_v7 = vsel %vm717_vm13, %v1881_v36, 128 }
 0x153   : > { %v762_v51 = vsel %vm761_vm7, %v758_v37, %v733_v53  ;;  %v764_v62 = vsel %vm763_vm8, %v760_v44, %v735_v63  ;;  %vm716_vm8 = vcmp.eq.f32.partialorder %v1814_v5, %v1924_v47  ;;  %v751_v8 = vsel %vm719_vm14, %v1916_v40, 128 }
 0x154   : > { %vm765_vm1 = vcmp.lt.s32.totalorder %v762_v51, %v737_v54  ;;  %vm767_vm2 = vcmp.lt.s32.totalorder %v764_v62, %v739_v1  ;;  %v753_v48 = vsel %vm721_vm15, %v1919_v42, 128  ;;  %v755_v49 = vsel %vm723_vm0, %v1922_v45, 128 }
 0x155   : > { %v766_v59 = vsel %vm765_vm1, %v762_v51, %v737_v54  ;;  %v768_v60 = vsel %vm767_vm2, %v764_v62, %v739_v1  ;;  %vm722_vm1 = vcmp.eq.f32.partialorder %v1832_v34, %v1924_v47  ;;  %vm724_vm2 = vcmp.eq.f32.partialorder %v1838_v43, %v1924_v47 }
 0x156   : > { %vm769_vm11 = vcmp.lt.s32.totalorder %v766_v59, %v741_v9  ;;  %vm771_vm10 = vcmp.lt.s32.totalorder %v768_v60, %v743_v16  ;;  %v726_v21 = vsel %vm694_vm3, %v1843_v2, 128  ;;  %v728_v31 = vsel %vm696_vm4, %v1846_v13, 128 }
 0x157   : > { %v770_v61 = vsel %vm769_vm11, %v766_v59, %v741_v9  ;;  %v772_v6 = vsel %vm771_vm10, %v768_v60, %v743_v16  ;;  %vm2284_vm15 = vcmp.eq.f32.partialorder %v1752_v58, %v1924_v47  ;;  %vm2285_vm0 = vcmp.eq.f32.partialorder %v1764_v4, %v1924_v47 }
 0x158   : > { %vm773_vm7 = vcmp.lt.s32.totalorder %v770_v61, %v745_v23  ;;  %vm775_vm5 = vcmp.lt.s32.totalorder %v772_v6, %v747_v30  ;;  %v730_v41 = vsel %vm2284_vm15, %v1849_v15, 128  ;;  %v732_v26 = vsel %vm2285_vm0, %v1852_v17, 128 }
 0x159   : > { %v774_v10 = vsel %vm773_vm7, %v770_v61, %v745_v23  ;;  %v776_v38 = vsel %vm775_vm5, %v772_v6, %v747_v30  ;;  %vm2286_vm4 = vcmp.eq.f32.partialorder %v1772_v11, %v1924_v47  ;;  %vm796_vm5 = vcmp.lt.s32.totalorder %v726_v21, %v730_v41 }
 0x15a   : > { %vm777_vm10 = vcmp.lt.s32.totalorder %v774_v10, %v749_v7  ;;  %vm779_vm11 = vcmp.lt.s32.totalorder %v776_v38, %v751_v8  ;;  %v734_v3 = vsel %vm2286_vm4, %v1855_v19, 128  ;;  %vm798_vm7 = vcmp.lt.s32.totalorder %v728_v31, %v732_v26 }
 0x15b   : > { %v778_v12 = vsel %vm777_vm10, %v774_v10, %v749_v7  ;;  %v780_v50 = vsel %vm779_vm11, %v776_v38, %v751_v8  ;;  %vm2287_vm10 = vcmp.eq.f32.partialorder %v1778_v18, %v1924_v47  ;;  %v797_v54 = vsel %vm796_vm5, %v726_v21, %v730_v41 }
 0x15c   : > { %vm781_vm13 = vcmp.lt.s32.totalorder %v778_v12, %v753_v48  ;;  %vm783_vm14 = vcmp.lt.s32.totalorder %v780_v50, %v755_v49  ;;  %v736_v58 = vsel %vm2287_vm10, %v1858_v20, 128  ;;  %v799_v4 = vsel %vm798_vm7, %v728_v31, %v732_v26 }
 0x15d   : > { %v782_v57 = vsel %vm781_vm13, %v778_v12, %v753_v48  ;;  %v784_v56 = vsel %vm783_vm14, %v780_v50, %v755_v49  ;;  %vm2288_vm11 = vcmp.eq.f32.partialorder %v1784_v25, %v1924_v47  ;;  %vm800_vm13 = vcmp.lt.s32.totalorder %v797_v54, %v734_v3 }
 0x15e   : > { %vm785_vm3 = vcmp.lt.s32.totalorder %v782_v57, %v784_v56  ;;  %v738_v1 = vsel %vm2288_vm11, %v1861_v22, 128  ;;  %vm802_vm14 = vcmp.lt.s32.totalorder %v799_v4, %v736_v58  ;;  %vm2289_vm0 = vcmp.eq.f32.partialorder %v1790_v32, %v1924_v47 }
 0x15f   : > { %v786_v53 = vsel %vm785_vm3, %v782_v57, %v784_v56  ;;  %v740_v11 = vsel %vm2289_vm0, %v1866_v27, 128  ;;  %v801_v9 = vsel %vm800_vm13, %v797_v54, %v734_v3  ;;  %v803_v16 = vsel %vm802_vm14, %v799_v4, %v736_v58 }
 0x160   : > { %v787_v63 = vrot.slane %v786_v53, 4  ;;  %vm804_vm3 = vcmp.lt.s32.totalorder %v801_v9, %v738_v1  ;;  %vm806_vm4 = vcmp.lt.s32.totalorder %v803_v16, %v740_v11  ;;  %v742_v18 = vsel %vm710_vm6, %v1869_v28, 128 }
 0x161   : > { %vm2290_vm5 = vcmp.eq.f32.partialorder %v1802_v46, %v1924_v47  ;;  %v805_v30 = vsel %vm804_vm3, %v801_v9, %v738_v1  ;;  %v807_v37 = vsel %vm806_vm4, %v803_v16, %v740_v11  ;;  %vm2291_vm7 = vcmp.eq.f32.partialorder %v1808_v55, %v1924_v47 }
 0x162   : > { %vm788_vm15 = vcmp.lt.s32.totalorder %v786_v53, %v787_v63  ;;  %v744_v25 = vsel %vm2290_vm5, %v1872_v29, 128  ;;  %v746_v32 = vsel %vm2291_vm7, %v1875_v33, 128  ;;  %vm808_vm10 = vcmp.lt.s32.totalorder %v805_v30, %v742_v18 }
 0x163   : > { %v789_v23 = vsel %vm788_vm15, %v786_v53, %v787_v63  ;;  %vm810_vm11 = vcmp.lt.s32.totalorder %v807_v37, %v744_v25  ;;  %v748_v39 = vsel %vm716_vm8, %v1878_v35, 128  ;;  %v809_v51 = vsel %vm808_vm10, %v805_v30, %v742_v18 }
 0x164   : > { %v790_v44 = vrot.slane %v789_v23, 2  ;;  %v811_v62 = vsel %vm810_vm11, %v807_v37, %v744_v25  ;;  %vm812_vm6 = vcmp.lt.s32.totalorder %v809_v51, %v746_v32  ;;  %v750_v46 = vsel %vm718_vm12, %v1881_v36, 128 }
 0x165   : > { %vm814_vm13 = vcmp.lt.s32.totalorder %v811_v62, %v748_v39  ;;  %v752_v55 = vsel %vm720_vm9, %v1916_v40, 128  ;;  %v813_v59 = vsel %vm812_vm6, %v809_v51, %v746_v32  ;;  %v754_v5 = vsel %vm722_vm1, %v1919_v42, 128 }
 0x166   : > { %v815_v60 = vsel %vm814_vm13, %v811_v62, %v748_v39  ;;  %vm816_vm8 = vcmp.lt.s32.totalorder %v813_v59, %v750_v46  ;;  %vm791_vm15 = vcmp.lt.s32.totalorder %v789_v23, %v790_v44  ;;  %v756_v14 = vsel %vm724_vm2, %v1922_v45, 128 }
 0x167   : > { %vm818_vm14 = vcmp.lt.s32.totalorder %v815_v60, %v752_v55  ;;  %v817_v61 = vsel %vm816_vm8, %v813_v59, %v750_v46  ;;  %v792_v8 = vsel %vm791_vm15, %v789_v23, %v790_v44  ;;  %v1521_v12 = vmov 1966171168  }
 0x168   : > { %v819_v6 = vsel %vm818_vm14, %v815_v60, %v752_v55  ;;  %vm820_vm12 = vcmp.lt.s32.totalorder %v817_v61, %v754_v5  ;;  %v793_v34 = vrot.slane %v792_v8, 1  ;;  %v837_v43 = vunpack.c.l.s4 %v1521_v12 }
 0x169   : > { %vm822_vm0 = vcmp.lt.s32.totalorder %v819_v6, %v756_v14  ;;  %v821_v24 = vsel %vm820_vm12, %v817_v61, %v754_v5  ;;  %v1522_v26 = vmov 1.0|1.0  }
 0x16a   : > { %v823_v7 = vsel %vm822_vm0, %v819_v6, %v756_v14  ;;  %vm794_vm3 = vcmp.lt.s32.totalorder %v792_v8, %v793_v34  ;;  %v838_v31 = vunpack.c.0.s8 %v837_v43 }
 0x16b   : > { %vm824_vm9 = vcmp.lt.s32.totalorder %v821_v24, %v823_v7  ;;  %v2086_v50 = vsel %vm794_vm3, %v792_v8, %v793_v34 }
 0x16c   : > { %v825_v10 = vsel %vm824_vm9, %v821_v24, %v823_v7  ;;  %vm855_vm5 = vcmp.eq.s32.totalorder %v1843_v2, %v2086_v50  ;;  %vm857_vm7 = vcmp.eq.s32.totalorder %v1846_v13, %v2086_v50  ;;  %v841_v57 = vsub.s32 %v838_v31, %v1843_v2 }
 0x16d   : > { %v826_v38 = vrot.slane %v825_v10, 4  ;;  %vm1309_vm14 = vmpackc.low %vm857_vm7, %vm855_vm5  ;;  %vm859_vm12 = vcmp.eq.s32.totalorder %v1849_v15, %v2086_v50  ;;  %vm861_vm0 = vcmp.eq.s32.totalorder %v1852_v17, %v2086_v50  ;;  %vm865_vm5 = vcmp.eq.s32.totalorder %v1858_v20, %v2086_v50 }
 0x16e   : > { %vm1313_vm3 = vmpackc.low %vm861_vm0, %vm859_vm12  ;;  %vm852_vm7 = vcmp.lt.s32.totalorder %v676_v52, 256  ;;  %v292_v52 = vld [vmem:[%s2278_s2] sm:$0xff] }
 0x16f   : > { %vm827_vm1 = vcmp.lt.s32.totalorder %v825_v10, %v826_v38 }
 0x170   : > { %v828_v48 = vsel %vm827_vm1, %v825_v10, %v826_v38 }
 0x171   : > { %v829_v49 = vrot.slane %v828_v48, 2 }
 0x173   : > { %vm830_vm4 = vcmp.lt.s32.totalorder %v828_v48, %v829_v49 }
 0x174   : > { %v831_v47 = vsel %vm830_vm4, %v828_v48, %v829_v49 }
 0x175   : > { %v832_v21 = vrot.slane %v831_v47, 1 }
 0x177   : > { %vm833_vm2 = vcmp.lt.s32.totalorder %v831_v47, %v832_v21 }
 0x178   : > { %v2088_v41 = vsel %vm833_vm2, %v831_v47, %v832_v21  ;;  %vm863_vm2 = vcmp.eq.s32.totalorder %v1855_v19, %v2086_v50 }
 0x179   : > { %vm856_vm10 = vcmp.eq.s32.totalorder %v1843_v2, %v2088_v41  ;;  %vm858_vm11 = vcmp.eq.s32.totalorder %v1846_v13, %v2088_v41  ;;  %vm860_vm6 = vcmp.eq.s32.totalorder %v1849_v15, %v2088_v41  ;;  %vm862_vm13 = vcmp.eq.s32.totalorder %v1852_v17, %v2088_v41  ;;  %v293_v17 = vld [vmem:[%s2278_s2 + $0x8] sm:$0xff] }
 0x17a   : > { %vm1307_vm8 = vmpackc.low %vm858_vm11, %vm856_vm10  ;;  %vm864_vm9 = vcmp.eq.s32.totalorder %v1855_v19, %v2088_v41  ;;  %vm866_vm1 = vcmp.eq.s32.totalorder %v1858_v20, %v2088_v41  ;;  %v835_v2 = vcombine.low %v2086_v50, %v2088_v41  ;;  %vm868_vm10 = vcmp.eq.s32.totalorder %v1861_v22, %v2088_v41  ;;  %v294_v19 = vld [vmem:[%s2278_s2 + $0x10] sm:$0xff]  ;;  %v295_v20 = vld [vmem:[%s2278_s2 + $0x18] sm:$0xff] }
 0x17b   : > { %1308 = vmatprep.subr.msk.bf16.mxu1 %vm1307_vm8, %v1522_v26  ;;  %vm1311_vm15 = vmpackc.low %vm862_vm13, %vm860_vm6  ;;  %vm870_vm11 = vcmp.eq.s32.totalorder %v1866_v27, %v2088_v41  ;;  %vm867_vm8 = vcmp.eq.s32.totalorder %v1861_v22, %v2086_v50  ;;  %vm874_vm12 = vcmp.eq.s32.totalorder %v1872_v29, %v2088_v41 }
 0x17c   : > { %1310 = vmatpush1.bf16.msk.msra.mxu1 %vm1309_vm14, %v1522_v26  ;;  %v842_v13 = vrot.slane %v835_v2, %v841_v57  ;;  %vm1315_vm4 = vmpackc.low %vm866_vm1, %vm864_vm9  ;;  %vm869_vm14 = vcmp.eq.s32.totalorder %v1866_v27, %v2086_v50  ;;  %vm871_vm1 = vcmp.eq.s32.totalorder %v1869_v28, %v2086_v50 }
 0x17d   : > { %1312 = vmatprep.subr.msk.bf16.mxu1 %vm1311_vm15, %v1522_v26  ;;  %vm1317_vm6 = vmpackc.low %vm865_vm5, %vm863_vm2  ;;  %vm872_vm15 = vcmp.eq.s32.totalorder %v1869_v28, %v2088_v41  ;;  %vm878_vm2 = vcmp.eq.s32.totalorder %v1878_v35, %v2088_v41 }
 0x17e   : > { %v849_v15 = vrot.slane %v842_v13, %v841_v57  ;;  %vm1319_vm13 = vmpackc.low %vm870_vm11, %vm868_vm10  ;;  %vm875_vm10 = vcmp.eq.s32.totalorder %v1875_v33, %v2086_v50  ;;  %vm877_vm11 = vcmp.eq.s32.totalorder %v1878_v35, %v2086_v50 }
 0x17f   : > { %vm1321_vm0 = vmpackc.low %vm869_vm14, %vm867_vm8 }
 0x180   : > { %1314 = vmatpush1.bf16.msk.msra.mxu1 %vm1313_vm3, %v1522_v26  ;;  %854 = vst.msk [vmem:[%s2131_s24] sm:$0x3] %vm852_vm7, %v849_v15  ;;  %vm1323_vm9 = vmpackc.low %vm874_vm12, %vm872_vm15  ;;  %vm873_vm3 = vcmp.eq.s32.totalorder %v1872_v29, %v2086_v50  ;;  %vm879_vm15 = vcmp.eq.s32.totalorder %v1881_v36, %v2086_v50  ;;  %vm881_vm12 = vcmp.eq.s32.totalorder %v1916_v40, %v2086_v50 }
 0x181   : > { %1316 = vmatprep.subr.msk.bf16.mxu1 %vm1315_vm4, %v1522_v26  ;;  %vm876_vm4 = vcmp.eq.s32.totalorder %v1875_v33, %v2088_v41  ;;  %vm1325_vm5 = vmpackc.low %vm873_vm3, %vm871_vm1 }
 0x182   : > { %vm1327_vm7 = vmpackc.low %vm878_vm2, %vm876_vm4  ;;  %vm883_vm4 = vcmp.eq.s32.totalorder %v1919_v42, %v2086_v50  ;;  %vm885_vm2 = vcmp.eq.s32.totalorder %v1922_v45, %v2086_v50 }
 0x183   : > { %vm1329_vm8 = vmpackc.low %vm877_vm11, %vm875_vm10 }
 0x184   : > { %1318 = vmatpush1.bf16.msk.msra.mxu1 %vm1317_vm6, %v1522_v26  ;;  %vm880_vm6 = vcmp.eq.s32.totalorder %v1881_v36, %v2088_v41  ;;  %vm1333_vm1 = vmpackc.low %vm881_vm12, %vm879_vm15 }
 0x185   : > { %1320 = vmatprep.subr.msk.bf16.mxu1 %vm1319_vm13, %v1522_v26  ;;  %vm882_vm13 = vcmp.eq.s32.totalorder %v1916_v40, %v2088_v41 }
 0x186   : > { %vm1331_vm14 = vmpackc.low %vm882_vm13, %vm880_vm6 }
 0x188   : > { %1322 = vmatpush1.bf16.msk.msra.mxu1 %vm1321_vm0, %v1522_v26  ;;  %vm884_vm0 = vcmp.eq.s32.totalorder %v1919_v42, %v2088_v41 }
 0x189   : > { %1324 = vmatprep.subr.msk.bf16.mxu1 %vm1323_vm9, %v1522_v26  ;;  %vm886_vm9 = vcmp.eq.s32.totalorder %v1922_v45, %v2088_v41 }
 0x18a   : > { %vm1335_vm3 = vmpackc.low %vm886_vm9, %vm884_vm0 }
 0x18c   : > { %1326 = vmatpush1.bf16.msk.msra.mxu1 %vm1325_vm5, %v1522_v26  ;;  %vm1337_vm5 = vmpackc.low %vm885_vm2, %vm883_vm4 }
 0x18d   : > { %1328 = vmatprep.subr.msk.bf16.mxu1 %vm1327_vm7, %v1522_v26 }
 0x190   : > { %1330 = vmatpush1.bf16.msk.msra.mxu1 %vm1329_vm8, %v1522_v26 }
 0x191   : > { %1332 = vmatprep.subr.msk.bf16.mxu1 %vm1331_vm14, %v1522_v26 }
 0x194   : > { %1334 = vmatpush1.bf16.msk.msra.mxu1 %vm1333_vm1, %v1522_v26 }
 0x195   : > { %1336 = vmatprep.subr.msk.bf16.mxu1 %vm1335_vm3, %v1522_v26 }
 0x198   : > { %1338 = vmatpush1.bf16.msk.msra.mxu1 %vm1337_vm5, %v1522_v26 }
 0x19b   : > { %1016 = vmatmul.mubr.f32.vlgmr.msra.gmra.mrb[0].mxu1 %v292_v52 }
 0x19c   : > { %1021 = vmatprep.mubr.f32.mxu1 %v1519_v0 }
 0x19f   : > { %1022 = vmatmul.mubr.f32.gmra.mrb[2].mxu1 %v293_v17 }
 0x1a0   : > { %1027 = vmatprep.mubr.f32.mxu1 %v1519_v0 }
 0x1a3   : > { %1028 = vmatmul.mubr.f32.gmra.mrb[4].mxu1 %v294_v19 }
 0x1a4   : > { %1033 = vmatprep.mubr.f32.mxu1 %v1519_v0 }
 0x1a7   : > { %1034 = vmatmul.mubr.f32.gmra.mrb[6].mxu1 %v295_v20 }
 0x1a8   : > { %1420 = shalt.err (!%p1417_p5)
}
 0x1a9   : > { %s1421_s24 = scalar_lea.hbm %s2200_s15, 32  ;;  %s1425_s11 = scalar_lea.hbm %s2280_s4, 64 }
 0x1aa   : > { %p1422_p6 = scmp.ne.s32.totalorder %s2200_s15, %s1421_s24  ;;  %p1426_p10 = scmp.lt.u32.totalorder %s2200_s15, %s2280_s4 }
 0x1ab   : > { %p1427_p11 = scmp.lt.u32.totalorder %s1425_s11, %s1421_s24  ;;  %p1429_p13 = scmp.lt.u32.totalorder %s1421_s24, %s2200_s15 }
 0x1ac   : > { %p1423_p7 = pnand %p1422_p6, %p1597_p4 }
 0x1ad   : > { %p1428_p12 = por %p1427_p11, %p1426_p10 }
 0x1ae   : > { %p1424_p9 = pneg %p1423_p7 }
 0x1af   : > { %p1430_p0 = por %p1429_p13, %p1428_p12 }
 0x1b1   : > { %p1431_p1 = pnand %p1430_p0, %p1424_p9 }
 0x1b3   : > { %1434 = shalt.err (!%p1431_p1)
}
 0x1b4   : > { %1339 = dma.vmem_to_hbm [thread:$0]  (%p1597_p4), %s1071_s17, 32, %s2200_s15, %s1049_s25  }
 0x1b5   : > { %s1205_s14 = sshll.u32 %s2103_s16, 6  ;;  %s1298_s7 = sshll.u32 %s1509_s21, 10 }
 0x1b6   : > { %s255_s27 = scalar_lea.vmem [#allocation4], %s1205_s14  ;;  %s2228_s25 = scalar_lea.hbm %s2281_s5, %s1298_s7 }
 0x1b7   : > { %s1085_s29 = sshll.u32 %s255_s27, 4  ;;  %s1054_s8 = scalar_lea.sflag [#allocation5], %s2103_s16  ;;  %s2223_s29 = int_to_ptr.vmem [resolvable:$true] %s1085_s29 }
 0x1b8   : > { %s1435_s24 = scalar_lea.vmem %s2223_s29, 1024  ;;  %s1524_s21 = smov [#allocation4]  }
 0x1b9   : > { %p1436_p2 = scmp.ne.s32.totalorder %s2223_s29, %s1435_s24  ;;  %s1439_s9 = sshll.u32 %s1524_s21, 4  ;;  %s1440_s9 = int_to_ptr.vmem [resolvable:$false] %s1439_s9 }
 0x1ba   : > { %s1441_s10 = scalar_lea.vmem %s1440_s9, 2048  ;;  %p1442_p6 = scmp.lt.s32.totalorder %s2223_s29, %s1440_s9 }
 0x1bb   : > { %p1437_p3 = pnand %p1436_p2, %p1597_p4  ;;  %p1443_p7 = scmp.lt.s32.totalorder %s1441_s10, %s1435_s24 }
 0x1bd   : > { %p1438_p5 = pneg %p1437_p3  ;;  %p1444_p9 = por %p1443_p7, %p1442_p6 }
 0x1bf   : > { %p1445_p10 = pnand %p1444_p9, %p1438_p5 }
 0x26e   : > { %v1017_v0 = vpop.f32.mrb[0].mxu1 }
 0x26f   : > { %1040 = vst [vmem:[%s255_s27] sm:$0xff] %v1017_v0  ;;  %v1019_v22 = vpop.f32.mrb[1].mxu1 }
 0x270   : > { %1041 = vst [vmem:[%s255_s27 + $0x8] sm:$0xff] %v1019_v22 }
 0x272   : > { %v1023_v27 = vpop.f32.mrb[2].mxu1 }
 0x273   : > { %1042 = vst [vmem:[%s255_s27 + $0x10] sm:$0xff] %v1023_v27  ;;  %v1025_v28 = vpop.f32.mrb[3].mxu1 }
 0x274   : > { %1043 = vst [vmem:[%s255_s27 + $0x18] sm:$0xff] %v1025_v28 }
 0x276   : > { %v1029_v29 = vpop.f32.mrb[4].mxu1 }
 0x277   : > { %1044 = vst [vmem:[%s255_s27 + $0x20] sm:$0xff] %v1029_v29  ;;  %v1031_v33 = vpop.f32.mrb[5].mxu1 }
 0x278   : > { %1045 = vst [vmem:[%s255_s27 + $0x28] sm:$0xff] %v1031_v33 }
 0x27a   : > { %v1035_v35 = vpop.f32.mrb[6].mxu1 }
 0x27b   : > { %1046 = vst [vmem:[%s255_s27 + $0x30] sm:$0xff] %v1035_v35  ;;  %v1037_v36 = vpop.f32.mrb[7].mxu1 }
 0x27c   : > { %1047 = vst [vmem:[%s255_s27 + $0x38] sm:$0xff] %v1037_v36 }
 0x27d   : > { %1448 = shalt.err (!%p1445_p10)
}
 0x27e   : > { %s1449_s11 = scalar_lea.hbm %s2228_s25, 1024  ;;  %s1453_s14 = scalar_lea.hbm %s2281_s5, 2048 }
 0x27f   : > { %p1450_p11 = scmp.ne.s32.totalorder %s2228_s25, %s1449_s11  ;;  %p1454_p0 = scmp.lt.u32.totalorder %s2228_s25, %s2281_s5 }
 0x280   : > { %p1455_p1 = scmp.lt.u32.totalorder %s1453_s14, %s1449_s11  ;;  %p1457_p3 = scmp.lt.u32.totalorder %s1449_s11, %s2228_s25 }
 0x281   : > { %p1451_p12 = pnand %p1450_p11, %p1597_p4 }
 0x282   : > { %p1456_p2 = por %p1455_p1, %p1454_p0 }
 0x283   : > { %p1452_p13 = pneg %p1451_p12 }
 0x284   : > { %p1458_p5 = por %p1457_p3, %p1456_p2 }
 0x286   : > { %p1459_p6 = pnand %p1458_p5, %p1452_p13 }
 0x288   : > { %1462 = shalt.err (!%p1459_p6)
}
 0x289   : > { %s1525_s15 = smov 256   ;;  %s1526_s17 = smov 16  }
 0x28a   : > { %1340 = dma.vmem_to_hbm [thread:$0]  (%p1597_p4), %s2223_s29, 1024, %s2228_s25, %s1054_s8, %s1525_s15, %s1525_s15, %s1526_s17  }
 0x28b PF: > { %p1350_p7 = scmp.ge.s32.totalorder %s1517_s23, 2  ;;  %s1100_s24 = sand.u32 1, %s1497_s18  }
 0x28c   : > { %s1101_s21 = scalar_lea.sflag [#allocation3], %s1100_s24 }
 0x28d   : > { %p1344_p9 = pnand %p1350_p7, %p1604_p8 }
 0x28f   : > { %1488 = dma.done.wait (!%p1344_p9), %s1101_s21, 32  }
 0x290   : > { %1490 = vsyncadd (!%p1344_p9), %s1101_s21, 4294967264  ;;  %s1110_s9 = scalar_lea.sflag [#allocation5], %s1100_s24 }
 0x291   : > { %1492 = dma.done.wait (!%p1344_p9), %s1110_s9, 1024  }
 0x292   : > { %1494 = vsyncadd (!%p1344_p9), %s1110_s9, 4294966272  ;;  %s22_s23 = sadd.s32 1, %s1517_s23   ;;  %s2292_s18 = smov %s1501_s19 }
 0x293   : > { %p19_p10 = scmp.ge.s32.totalorder %s22_s23, 4   ;;  %s2293_s19 = smov %s1505_s20 }
 0x294   : > { %s2294_s20 = smov %s1610_s6  ;;  %s2295_s21 = smov %s1513_s22 }
 0x295   : > { %s2296_s22 = smov %s2298_s26  ;;  %21 = sbr.rel (!%p19_p10) target bundleno = 6 (0x6), region = 88 }
 0x29c   :  { %1115 = vsyncpa [#allocation3], 1 }
 0x29d   :  { %1117 = vsyncpa [#allocation3 + $0x1], 1 }
 0x29e   :  { %1118 = vsyncpa [#allocation5], 1 }
 0x29f   :  { %1120 = vsyncpa [#allocation5 + $0x1], 1 }

</bundles_post_ra>
